<compile_context>
chip_gen: v6e
topology: v6e:2x2x1
jax: 0.10.0
libtpu: 0.0.40
codegen_flags: <defaults>
</compile_context>

<pallas_src>
import math
import functools

import jax
import jax.numpy as jnp
from jax import lax
from jax.experimental import pallas as pl
from jax.experimental.pallas import tpu as pltpu

NEG_INF = -1e9
LN_EPS = 1e-5
COMPUTE_DTYPE = jnp.bfloat16


def _round_up(x, m):
    return (x + m - 1) // m * m


def _default_vmem_limit():
    # Generation-aware scoped-VMEM budget: ~half of physical VMEM, capped at 64 MiB.
    # (128 MiB parts -> 64 MiB, v7x 64 MiB parts -> 32 MiB, always leaving compiler headroom.)
    try:
        cap = int(pltpu.get_tpu_info().vmem_capacity_bytes)
    except Exception:
        cap = 64 * 1024 * 1024
    return int(min(64 * 1024 * 1024, max(cap // 2, 16 * 1024 * 1024)))


VMEM_LIMIT_BYTES = _default_vmem_limit()


def _tile_and_pad(dim, preferred):
    """Pick a tile (<= dim) from `preferred` minimizing padding and return (tile, padded_dim).
    Dims smaller than every preferred tile become a single full-dim block (legal)."""
    cands = [t for t in preferred if t <= dim]
    if not cands:
        return dim, dim
    tile = min(cands, key=lambda t: (_round_up(dim, t), -t))
    return tile, _round_up(dim, tile)


def _pad2d(x, rows, cols):
    pr, pc = rows - x.shape[0], cols - x.shape[1]
    if pr or pc:
        x = jnp.pad(x, ((0, pr), (0, pc)))
    return x


# ----------------------------- tiled linear: x @ W + b -----------------------------

def _matmul_bias_kernel(x_ref, w_ref, b_ref, o_ref, acc_ref):
    @pl.when(pl.program_id(2) == 0)
    def _init():
        acc_ref[...] = jnp.zeros_like(acc_ref)

    acc_ref[...] += jnp.dot(x_ref[...], w_ref[...], preferred_element_type=jnp.float32)

    @pl.when(pl.program_id(2) == pl.num_programs(2) - 1)
    def _finalize():
        o_ref[...] = (acc_ref[...] + b_ref[...]).astype(o_ref.dtype)


def linear(x2d, w, b, out_dtype=None):
    # TODO(synk): mark the bias BlockSpec with pipeline_mode=pl.Buffered(1) once single-buffered
    # pipeline_mode is reliably supported (avoids double-buffering a constant block).
    M, K = x2d.shape
    N = w.shape[1]
    out_dtype = out_dtype if out_dtype is not None else x2d.dtype
    tm, Mp = _tile_and_pad(M, (256, 128))
    tn, Np = _tile_and_pad(N, (512, 256, 128))   # wide N tiles: fewer re-reads of x (vocab proj)
    tk, Kp = _tile_and_pad(K, (512, 256, 128))
    xp = _pad2d(x2d, Mp, Kp)
    wp = _pad2d(w, Kp, Np)
    bp = b if Np == N else jnp.pad(b, (0, Np - N))
    b2 = bp.reshape(1, Np).astype(jnp.float32)
    grid = (Mp // tm, Np // tn, Kp // tk)
    out_itemsize = jnp.dtype(out_dtype).itemsize
    cost = pl.CostEstimate(
        flops=2 * Mp * Np * Kp,
        transcendentals=0,
        bytes_accessed=Mp * Kp * 2 + Kp * Np * 2 + Np * 4 + Mp * Np * out_itemsize,
    )
    out = pl.pallas_call(
        _matmul_bias_kernel,
        out_shape=jax.ShapeDtypeStruct((Mp, Np), out_dtype),
        grid_spec=pltpu.PrefetchScalarGridSpec(
            num_scalar_prefetch=0,
            grid=grid,
            in_specs=[
                pl.BlockSpec((tm, tk), lambda i, j, k: (i, k)),
                pl.BlockSpec((tk, tn), lambda i, j, k: (k, j)),
                pl.BlockSpec((1, tn), lambda i, j, k: (0, j)),
            ],
            out_specs=pl.BlockSpec((tm, tn), lambda i, j, k: (i, j)),
            scratch_shapes=[pltpu.VMEM((tm, tn), jnp.float32)],
        ),
        compiler_params=pltpu.CompilerParams(
            dimension_semantics=("parallel", "parallel", "arbitrary"),
            vmem_limit_bytes=VMEM_LIMIT_BYTES,
        ),
        cost_estimate=cost,
    )(xp, wp, b2)
    if Mp != M or Np != N:
        out = out[:M, :N]
    return out


# ---------------- fused: LayerNorm(residual + x @ W + b) (Wo projection epilogue) ----------------

def _matmul_res_ln_kernel(x_ref, w_ref, b_ref, res_ref, g_ref, bb_ref, o_ref, acc_ref):
    @pl.when(pl.program_id(1) == 0)
    def _init():
        acc_ref[...] = jnp.zeros_like(acc_ref)

    acc_ref[...] += jnp.dot(x_ref[...], w_ref[...], preferred_element_type=jnp.float32)

    @pl.when(pl.program_id(1) == pl.num_programs(1) - 1)
    def _finalize():
        h = acc_ref[...] + b_ref[...] + res_ref[...].astype(jnp.float32)
        mu = jnp.mean(h, axis=-1, keepdims=True)
        var = jnp.mean(jnp.square(h - mu), axis=-1, keepdims=True)
        o_ref[...] = ((h - mu) * lax.rsqrt(var + LN_EPS) * g_ref[...] + bb_ref[...]
                      ).astype(o_ref.dtype)


def linear_residual_layernorm(x2d, w, b, res2d, gamma, beta, out_dtype=None):
    M, K = x2d.shape
    N = w.shape[1]          # = d_model, kept whole so the LayerNorm reduction stays in-tile
    out_dtype = out_dtype if out_dtype is not None else x2d.dtype
    tm, Mp = _tile_and_pad(M, (256, 128))
    tk, Kp = _tile_and_pad(K, (512, 256, 128))
    xp = _pad2d(x2d, Mp, Kp)
    wp = _pad2d(w, Kp, N)
    resp = _pad2d(res2d, Mp, N)
    grid = (Mp // tm, Kp // tk)
    out_itemsize = jnp.dtype(out_dtype).itemsize
    cost = pl.CostEstimate(
        flops=2 * Mp * N * Kp + 10 * Mp * N,
        transcendentals=Mp,
        bytes_accessed=Mp * Kp * 2 + Kp * N * 2 + Mp * N * 2 + 3 * N * 4 + Mp * N * out_itemsize,
    )
    out = pl.pallas_call(
        _matmul_res_ln_kernel,
        out_shape=jax.ShapeDtypeStruct((Mp, N), out_dtype),
        grid_spec=pltpu.PrefetchScalarGridSpec(
            num_scalar_prefetch=0,
            grid=grid,
            in_specs=[
                pl.BlockSpec((tm, tk), lambda i, k: (i, k)),
                pl.BlockSpec((tk, N), lambda i, k: (k, 0)),
                pl.BlockSpec((1, N), lambda i, k: (0, 0)),
                pl.BlockSpec((tm, N), lambda i, k: (i, 0)),
                pl.BlockSpec((1, N), lambda i, k: (0, 0)),
                pl.BlockSpec((1, N), lambda i, k: (0, 0)),
            ],
            out_specs=pl.BlockSpec((tm, N), lambda i, k: (i, 0)),
            scratch_shapes=[pltpu.VMEM((tm, N), jnp.float32)],
        ),
        compiler_params=pltpu.CompilerParams(
            dimension_semantics=("parallel", "arbitrary"),
            vmem_limit_bytes=VMEM_LIMIT_BYTES,
        ),
        cost_estimate=cost,
    )(xp, wp, b.reshape(1, N).astype(jnp.float32), resp,
      gamma.reshape(1, N).astype(jnp.float32), beta.reshape(1, N).astype(jnp.float32))
    if Mp != M:
        out = out[:M]
    return out


# ---------------- fused FFN: LayerNorm(x + ReLU(x@W1+b1)@W2 + b2) ----------------
# Two variants, selected at trace time from the generation-aware VMEM budget:
#   * resident: W1/W2 live in VMEM across the row grid (v5e/v6e, small-to-mid d_ff)
#   * blocked : extra "arbitrary" reduction axis over d_ff with an f32 accumulator (v7x / big d_ff)

def _ffn_resident_kernel(x_ref, w1_ref, b1_ref, w2_ref, b2_ref, g_ref, bb_ref, o_ref):
    h = jnp.dot(x_ref[...], w1_ref[...], preferred_element_type=jnp.float32) + b1_ref[...]
    h = jnp.maximum(h, 0.0).astype(x_ref.dtype)   # back to bf16 for the second MXU pass
    y = jnp.dot(h, w2_ref[...], preferred_element_type=jnp.float32) + b2_ref[...]
    y = y + x_ref[...].astype(jnp.float32)        # residual = FFN input (same block)
    mu = jnp.mean(y, axis=-1, keepdims=True)
    var = jnp.mean(jnp.square(y - mu), axis=-1, keepdims=True)
    o_ref[...] = ((y - mu) * lax.rsqrt(var + LN_EPS) * g_ref[...] + bb_ref[...]).astype(o_ref.dtype)


def _ffn_blocked_kernel(x_ref, w1_ref, b1_ref, w2_ref, b2_ref, g_ref, bb_ref, o_ref, acc_ref):
    f = pl.program_id(1)

    @pl.when(f == 0)
    def _init():
        acc_ref[...] = jnp.zeros_like(acc_ref)

    h = jnp.dot(x_ref[...], w1_ref[...], preferred_element_type=jnp.float32) + b1_ref[...]
    h = jnp.maximum(h, 0.0).astype(x_ref.dtype)
    acc_ref[...] += jnp.dot(h, w2_ref[...], preferred_element_type=jnp.float32)

    @pl.when(f == pl.num_programs(1) - 1)
    def _finalize():
        y = acc_ref[...] + b2_ref[...] + x_ref[...].astype(jnp.float32)
        mu = jnp.mean(y, axis=-1, keepdims=True)
        var = jnp.mean(jnp.square(y - mu), axis=-1, keepdims=True)
        o_ref[...] = ((y - mu) * lax.rsqrt(var + LN_EPS) * g_ref[...] + bb_ref[...]
                      ).astype(o_ref.dtype)


def ffn_residual_layernorm(x2d, w1, b1, w2, b2, gamma, beta):
    M, D = x2d.shape
    F = w1.shape[1]
    wbytes = jnp.dtype(w1.dtype).itemsize
    g2 = gamma.reshape(1, D).astype(jnp.float32)
    bb2 = beta.reshape(1, D).astype(jnp.float32)
    b2_2 = b2.reshape(1, D).astype(jnp.float32)

    # Resident-weight estimate: pipeline double-buffers even constant blocks, plus the
    # [tm, F] f32 intermediate and a handful of [tm, D] activation buffers.
    tm_res, Mp_res = _tile_and_pad(M, (512, 256, 128))
    resident_bytes = 2 * (2 * D * F * wbytes) + tm_res * F * 4 + 8 * tm_res * D * 4
    use_resident = resident_bytes <= (VMEM_LIMIT_BYTES * 3) // 4
    # TODO(synk): pipeline_mode=pl.Buffered(1) on the constant-index weight/bias blocks would
    # halve the resident-weight VMEM once single-buffering is reliably supported.

    if use_resident:
        tm, Mp = tm_res, Mp_res
        xp = _pad2d(x2d, Mp, D)
        cost = pl.CostEstimate(
            flops=4 * Mp * D * F + 10 * Mp * D,
            transcendentals=Mp,
            bytes_accessed=Mp * D * 2 * 2 + 2 * D * F * wbytes + (F + 3 * D) * 4,
        )
        out = pl.pallas_call(
            _ffn_resident_kernel,
            out_shape=jax.ShapeDtypeStruct((Mp, D), x2d.dtype),
            grid_spec=pltpu.PrefetchScalarGridSpec(
                num_scalar_prefetch=0,
                grid=(Mp // tm,),
                in_specs=[
                    pl.BlockSpec((tm, D), lambda i: (i, 0)),
                    pl.BlockSpec((D, F), lambda i: (0, 0)),
                    pl.BlockSpec((1, F), lambda i: (0, 0)),
                    pl.BlockSpec((F, D), lambda i: (0, 0)),
                    pl.BlockSpec((1, D), lambda i: (0, 0)),
                    pl.BlockSpec((1, D), lambda i: (0, 0)),
                    pl.BlockSpec((1, D), lambda i: (0, 0)),
                ],
                out_specs=pl.BlockSpec((tm, D), lambda i: (i, 0)),
            ),
            compiler_params=pltpu.CompilerParams(
                dimension_semantics=("parallel",),
                vmem_limit_bytes=VMEM_LIMIT_BYTES,
            ),
            cost_estimate=cost,
        )(xp, w1, b1.reshape(1, F).astype(jnp.float32), w2, b2_2, g2, bb2)
    else:
        tm, Mp = _tile_and_pad(M, (256, 128))
        tf, Fp = _tile_and_pad(F, (1024, 512, 256))
        xp = _pad2d(x2d, Mp, D)
        w1p = _pad2d(w1, D, Fp)
        w2p = _pad2d(w2, Fp, D)
        b1p = b1 if Fp == F else jnp.pad(b1, (0, Fp - F))
        cost = pl.CostEstimate(
            flops=4 * Mp * D * Fp + 10 * Mp * D,
            transcendentals=Mp,
            bytes_accessed=(Mp // tm) * (2 * D * Fp * wbytes) + Mp * D * 2 * 2 + (Fp + 3 * D) * 4,
        )
        out = pl.pallas_call(
            _ffn_blocked_kernel,
            out_shape=jax.ShapeDtypeStruct((Mp, D), x2d.dtype),
            grid_spec=pltpu.PrefetchScalarGridSpec(
                num_scalar_prefetch=0,
                grid=(Mp // tm, Fp // tf),
                in_specs=[
                    pl.BlockSpec((tm, D), lambda i, f: (i, 0)),
                    pl.BlockSpec((D, tf), lambda i, f: (0, f)),
                    pl.BlockSpec((1, tf), lambda i, f: (0, f)),
                    pl.BlockSpec((tf, D), lambda i, f: (f, 0)),
                    pl.BlockSpec((1, D), lambda i, f: (0, 0)),
                    pl.BlockSpec((1, D), lambda i, f: (0, 0)),
                    pl.BlockSpec((1, D), lambda i, f: (0, 0)),
                ],
                out_specs=pl.BlockSpec((tm, D), lambda i, f: (i, 0)),
                scratch_shapes=[pltpu.VMEM((tm, D), jnp.float32)],
            ),
            compiler_params=pltpu.CompilerParams(
                dimension_semantics=("parallel", "arbitrary"),
                vmem_limit_bytes=VMEM_LIMIT_BYTES,
            ),
            cost_estimate=cost,
        )(xp, w1p, b1p.reshape(1, Fp).astype(jnp.float32), w2p, b2_2, g2, bb2)
    if Mp != M:
        out = out[:M]
    return out


# ----------------------------- attention kernel -----------------------------
# One grid step = (batch, query tile). K/V for the whole (source) sequence are resident per step
# and their block index is invariant over the query-tile axis, so they are not re-DMA'd between
# query tiles. Heads are processed with one head-batched einsum (q/k/v viewed as [H, T, dh]);
# the per-tile causal mask is built from program_id (no mask DMA); 1/sqrt(dh) is folded into q;
# the output is written with a single lane-dense [tq, D] store.
# TODO(synk): for very long Tk switch to online-softmax over KV tiles so the KV working set
# stays bounded instead of holding the full [Tk, 2D] block in VMEM.

def _attention_kernel(q_ref, kv_ref, o_ref, *, n_heads, scale, causal):
    tq = q_ref.shape[1]
    D = q_ref.shape[2]
    Tk = kv_ref.shape[1]
    dh = D // n_heads

    q = q_ref[0, :, :] * scale                                                   # [tq, D] bf16
    qh = jnp.stack([q[:, h * dh:(h + 1) * dh] for h in range(n_heads)], axis=0)  # [H, tq, dh]
    kh = jnp.stack([kv_ref[0, :, h * dh:(h + 1) * dh] for h in range(n_heads)], axis=0)
    vh = jnp.stack([kv_ref[0, :, D + h * dh:D + (h + 1) * dh] for h in range(n_heads)], axis=0)

    s = jnp.einsum('hqd,hkd->hqk', qh, kh, preferred_element_type=jnp.float32)   # [H, tq, Tk]
    if causal:
        q0 = pl.program_id(1) * tq
        row = q0 + lax.broadcasted_iota(jnp.int32, (tq, Tk), 0)
        col = lax.broadcasted_iota(jnp.int32, (tq, Tk), 1)
        s = s + jnp.where(col > row, NEG_INF, 0.0)[None, :, :]

    m = jnp.max(s, axis=-1, keepdims=True)
    p = jnp.exp(s - m)
    p = p * pl.reciprocal(jnp.sum(p, axis=-1, keepdims=True), approx=True)
    o = jnp.einsum('hqk,hkd->hqd', p.astype(vh.dtype), vh,
                   preferred_element_type=jnp.float32)                           # [H, tq, dh]
    # single lane-dense store (no per-head dh-wide partial stores)
    o_ref[0, :, :] = jnp.concatenate([o[h] for h in range(n_heads)], axis=-1).astype(o_ref.dtype)


def attention(q, kv, n_heads, causal):
    # q: [B, Tq, D], kv: [B, Tk, 2D] -> [B, Tq, D]
    B, Tq, D = q.shape
    Tk = kv.shape[1]
    dh = D // n_heads
    scale = 1.0 / math.sqrt(dh)
    tq, Tqp = _tile_and_pad(Tq, (256, 128))
    if Tqp != Tq:
        q = jnp.pad(q, ((0, 0), (0, Tqp - Tq), (0, 0)))
    cost = pl.CostEstimate(
        flops=4 * B * n_heads * Tqp * Tk * dh,
        transcendentals=B * n_heads * Tqp * Tk,
        bytes_accessed=B * Tqp * D * 2 * 2 + B * Tk * 2 * D * 2,
    )
    out = pl.pallas_call(
        functools.partial(_attention_kernel, n_heads=n_heads, scale=scale, causal=causal),
        out_shape=jax.ShapeDtypeStruct((B, Tqp, D), q.dtype),
        grid=(B, Tqp // tq),
        in_specs=[
            pl.BlockSpec((1, tq, D), lambda b, i: (b, i, 0)),
            pl.BlockSpec((1, Tk, 2 * D), lambda b, i: (b, 0, 0)),   # invariant over i: KV not re-DMA'd
        ],
        out_specs=pl.BlockSpec((1, tq, D), lambda b, i: (b, i, 0)),
        compiler_params=pltpu.CompilerParams(
            dimension_semantics=("parallel", "parallel"),   # 2 parallel axes -> both v7x TCs fed
            vmem_limit_bytes=VMEM_LIMIT_BYTES,
        ),
        cost_estimate=cost,
    )(q, kv)
    if Tqp != Tq:
        out = out[:, :Tq]
    return out


# ----------------------------- model glue (plain JAX) -----------------------------

def decoder_layer(x, enc, p, n_heads):
    B, Tt, D = x.shape
    Ts = enc.shape[1]
    x2d = x.reshape(B * Tt, D)
    enc2d = enc.reshape(B * Ts, D)

    # --- self-attention (causal) -> Add & Norm (norm1 fused into the Wo-projection epilogue) ---
    q = linear(x2d, p["sa_wq"], p["sa_bq"]).reshape(B, Tt, D)
    kv = linear(x2d, p["sa_w_kv"], p["sa_b_kv"]).reshape(B, Tt, 2 * D)
    sa = attention(q, kv, n_heads, causal=True)
    x2d = linear_residual_layernorm(sa.reshape(B * Tt, D), p["sa_wo"], p["sa_bo"],
                                    x2d, p["norm1_g"], p["norm1_b"])

    # --- cross-attention (no mask) -> Add & Norm (norm2 fused) ---
    q = linear(x2d, p["ca_wq"], p["ca_bq"]).reshape(B, Tt, D)
    kv = linear(enc2d, p["ca_w_kv"], p["ca_b_kv"]).reshape(B, Ts, 2 * D)
    ca = attention(q, kv, n_heads, causal=False)
    x2d = linear_residual_layernorm(ca.reshape(B * Tt, D), p["ca_wo"], p["ca_bo"],
                                    x2d, p["norm2_g"], p["norm2_b"])

    # --- feed-forward -> Add & Norm (norm3 fused) ---
    x2d = ffn_residual_layernorm(x2d, p["ff_w1"], p["ff_b1"], p["ff_w2"], p["ff_b2"],
                                 p["norm3_g"], p["norm3_b"])
    return x2d.reshape(B, Tt, D)


def positional_encoding(max_len, d_model):
    pos = jnp.arange(max_len, dtype=jnp.float32)[:, None]
    i = jnp.arange(0, d_model, 2, dtype=jnp.float32)[None, :]
    angle = pos / jnp.power(10000.0, i / d_model)
    pe = jnp.zeros((max_len, d_model), jnp.float32)
    pe = pe.at[:, 0::2].set(jnp.sin(angle))
    pe = pe.at[:, 1::2].set(jnp.cos(angle))
    return pe


def transformer_decoder_forward(tgt_tokens, encoder_output, params, n_heads):
    # tgt_tokens: [B, Tt] int32, encoder_output: [B, Ts, D] f32
    B, Tt = tgt_tokens.shape
    D = params["embedding"].shape[1]
    V = params["out_w"].shape[1]

    # TODO(synk): embedding gather + positional-encoding add stay in XLA (random-row gather
    # has no clean Pallas tile); dropout is inference-mode identity.
    x = params["embedding"][tgt_tokens] * jnp.sqrt(jnp.float32(D))
    x = x + params["pe"][:Tt][None, :, :]
    x = x.astype(COMPUTE_DTYPE)
    enc = encoder_output.astype(COMPUTE_DTYPE)

    for layer_p in params["layers"]:
        x = decoder_layer(x, enc, layer_p, n_heads)

    logits = linear(x.reshape(B * Tt, D), params["out_w"], params["out_b"],
                    out_dtype=jnp.float32)
    return logits.reshape(B, Tt, V)


# ----------------------------- deterministic init -----------------------------

def _w(key, shape):
    return (0.02 * jax.random.normal(key, shape, jnp.float32)).astype(COMPUTE_DTYPE)


def init_params(key, vocab_size, d_model, n_layers, d_ff, max_seq_len):
    keys = jax.random.split(key, 2 + n_layers)
    params = {
        "embedding": 0.02 * jax.random.normal(keys[0], (vocab_size, d_model), jnp.float32),
        "pe": positional_encoding(max_seq_len, d_model),
        "out_w": _w(keys[1], (d_model, vocab_size)),
        "out_b": jnp.zeros((vocab_size,), jnp.float32),
        "layers": [],
    }
    for l in range(n_layers):
        lk = jax.random.split(keys[2 + l], 8)
        layer = {
            # self-attention: Q projection + fused KV projection + output projection
            "sa_wq": _w(lk[0], (d_model, d_model)),
            "sa_bq": jnp.zeros((d_model,), jnp.float32),
            "sa_w_kv": _w(lk[1], (d_model, 2 * d_model)),
            "sa_b_kv": jnp.zeros((2 * d_model,), jnp.float32),
            "sa_wo": _w(lk[2], (d_model, d_model)),
            "sa_bo": jnp.zeros((d_model,), jnp.float32),
            # cross-attention: Q projection + fused KV projection + output projection
            "ca_wq": _w(lk[3], (d_model, d_model)),
            "ca_bq": jnp.zeros((d_model,), jnp.float32),
            "ca_w_kv": _w(lk[4], (d_model, 2 * d_model)),
            "ca_b_kv": jnp.zeros((2 * d_model,), jnp.float32),
            "ca_wo": _w(lk[5], (d_model, d_model)),
            "ca_bo": jnp.zeros((d_model,), jnp.float32),
            # feed-forward
            "ff_w1": _w(lk[6], (d_model, d_ff)),
            "ff_b1": jnp.zeros((d_ff,), jnp.float32),
            "ff_w2": _w(lk[7], (d_ff, d_model)),
            "ff_b2": jnp.zeros((d_model,), jnp.float32),
            # layer norms
            "norm1_g": jnp.ones((d_model,), jnp.float32),
            "norm1_b": jnp.zeros((d_model,), jnp.float32),
            "norm2_g": jnp.ones((d_model,), jnp.float32),
            "norm2_b": jnp.zeros((d_model,), jnp.float32),
            "norm3_g": jnp.ones((d_model,), jnp.float32),
            "norm3_b": jnp.zeros((d_model,), jnp.float32),
        }
        params["layers"].append(layer)
    return params


# ----------------------------- main -----------------------------

if __name__ == "__main__":
    vocab_size = 50
    d_model = 32
    n_heads = 4
    n_layers = 2
    d_ff = 64
    max_seq_len = 16
    B, Tt, Ts = 2, 8, 8

    key = jax.random.PRNGKey(0)
    k_params, k_tgt, k_enc = jax.random.split(key, 3)

    params = init_params(k_params, vocab_size, d_model, n_layers, d_ff, max_seq_len)
    tgt = jax.random.randint(k_tgt, (B, Tt), 0, vocab_size, dtype=jnp.int32)
    encoder_output = jax.random.normal(k_enc, (B, Ts, d_model), jnp.float32)

    fwd = jax.jit(transformer_decoder_forward, static_argnums=(3,))
    logits = fwd(tgt, encoder_output, params, n_heads)
    jax.block_until_ready(logits)

    assert logits.shape == (B, Tt, vocab_size), logits.shape
    assert bool(jnp.all(jnp.isfinite(logits)))
    print("KERNEL_OK")
</pallas_src>

<mosaic_0001>
module attributes {stable_mosaic.version = 11 : i64} {
  func.func @_matmul_bias_kernel(%arg0: i32, %arg1: i32, %arg2: i32, %arg3: memref<16x32xbf16, #tpu.memory_space<vmem>>, %arg4: memref<32x64xbf16, #tpu.memory_space<vmem>>, %arg5: memref<1x64xf32, #tpu.memory_space<vmem>>, %arg6: memref<16x64xbf16, #tpu.memory_space<vmem>>, %arg7: memref<16x64xf32, #tpu.memory_space<vmem>>) attributes {dimension_semantics = [#tpu.dimension_semantics<parallel>, #tpu.dimension_semantics<parallel>, #tpu.dimension_semantics<arbitrary>], iteration_bounds = array<i64: 1, 1, 1>, scalar_prefetch = 0 : i64, scratch_operands = 1 : i64, tpu.core_type = #tpu.core_type<tc>, window_params = [{transform_indices = @transform_0, window_bounds = array<i64: 16, 32>}, {transform_indices = @transform_1, window_bounds = array<i64: 32, 64>}, {transform_indices = @transform_2, window_bounds = array<i64: 1, 64>}, {transform_indices = @transform_3, window_bounds = array<i64: 16, 64>}]} {
    %c0_i32 = arith.constant 0 : i32
    %0 = arith.cmpi eq, %arg2, %c0_i32 : i32
    %1 = arith.extui %0 : i1 to i32
    %c0_i32_0 = arith.constant 0 : i32
    %2 = arith.cmpi ne, %1, %c0_i32_0 : i32
    scf.if %2 {
      %cst_10 = arith.constant 0.000000e+00 : f32
      %12 = vector.broadcast %cst_10 : f32 to vector<16x64xf32>
      %c0_11 = arith.constant 0 : index
      %c0_12 = arith.constant 0 : index
      %13 = vector.load %arg7[%c0_11, %c0_12] : memref<16x64xf32, #tpu.memory_space<vmem>>, vector<16x64xf32>
      tpu.vector_store %arg7[%c0_11, %c0_12], %12 {strides = array<i32>} : memref<16x64xf32, #tpu.memory_space<vmem>>, vector<16x64xf32>,
    } else {
    }
    %c0 = arith.constant 0 : index
    %c0_1 = arith.constant 0 : index
    %3 = vector.load %arg7[%c0, %c0_1] : memref<16x64xf32, #tpu.memory_space<vmem>>, vector<16x64xf32>
    %c0_2 = arith.constant 0 : index
    %c0_3 = arith.constant 0 : index
    %4 = vector.load %arg3[%c0_2, %c0_3] : memref<16x32xbf16, #tpu.memory_space<vmem>>, vector<16x32xbf16>
    %c0_4 = arith.constant 0 : index
    %c0_5 = arith.constant 0 : index
    %5 = vector.load %arg4[%c0_4, %c0_5] : memref<32x64xbf16, #tpu.memory_space<vmem>>, vector<32x64xbf16>
    %cst = arith.constant dense<0.000000e+00> : vector<16x64xf32>
    %6 = tpu.matmul %4, %5, %cst {dimension_numbers = #tpu.dot_dimension_numbers<[1], [0], [0], [1], [0, 0, 1, 1], [], []>} : vector<16x32xbf16>, vector<32x64xbf16>, vector<16x64xf32> -> vector<16x64xf32>
    %7 = arith.addf %3, %6 : vector<16x64xf32>
    %c0_6 = arith.constant 0 : index
    %c0_7 = arith.constant 0 : index
    %8 = vector.load %arg7[%c0_6, %c0_7] : memref<16x64xf32, #tpu.memory_space<vmem>>, vector<16x64xf32>
    tpu.vector_store %arg7[%c0_6, %c0_7], %7 {strides = array<i32>} : memref<16x64xf32, #tpu.memory_space<vmem>>, vector<16x64xf32>,
    %c0_i32_8 = arith.constant 0 : i32
    %9 = arith.cmpi eq, %arg2, %c0_i32_8 : i32
    %10 = arith.extui %9 : i1 to i32
    %c0_i32_9 = arith.constant 0 : i32
    %11 = arith.cmpi ne, %10, %c0_i32_9 : i32
    scf.if %11 {
      %c0_10 = arith.constant 0 : index
      %c0_11 = arith.constant 0 : index
      %12 = vector.load %arg7[%c0_10, %c0_11] : memref<16x64xf32, #tpu.memory_space<vmem>>, vector<16x64xf32>
      %c0_12 = arith.constant 0 : index
      %c0_13 = arith.constant 0 : index
      %13 = vector.load %arg5[%c0_12, %c0_13] : memref<1x64xf32, #tpu.memory_space<vmem>>, vector<1x64xf32>
      %14 = vector.broadcast %13 : vector<1x64xf32> to vector<16x64xf32>
      %15 = arith.addf %12, %14 : vector<16x64xf32>
      %16 = arith.truncf %15 : vector<16x64xf32> to vector<16x64xbf16>
      %c0_14 = arith.constant 0 : index
      %c0_15 = arith.constant 0 : index
      %17 = vector.load %arg6[%c0_14, %c0_15] : memref<16x64xbf16, #tpu.memory_space<vmem>>, vector<16x64xbf16>
      tpu.vector_store %arg6[%c0_14, %c0_15], %16 {strides = array<i32>} : memref<16x64xbf16, #tpu.memory_space<vmem>>, vector<16x64xbf16>,
    } else {
    }
    return
  }
  func.func @transform_0(%arg0: i32, %arg1: i32, %arg2: i32) -> (i32, i32) {
    %c0_i32 = arith.constant 0 : i32
    return %arg0, %arg2 : i32, i32
  }
  func.func @transform_1(%arg0: i32, %arg1: i32, %arg2: i32) -> (i32, i32) {
    %c0_i32 = arith.constant 0 : i32
    return %arg2, %arg1 : i32, i32
  }
  func.func @transform_2(%arg0: i32, %arg1: i32, %arg2: i32) -> (i32, i32) {
    %c0_i32 = arith.constant 0 : i32
    %c0_i32_0 = arith.constant 0 : i32
    return %c0_i32, %arg1 : i32, i32
  }
  func.func @transform_3(%arg0: i32, %arg1: i32, %arg2: i32) -> (i32, i32) {
    %c0_i32 = arith.constant 0 : i32
    return %arg0, %arg1 : i32, i32
  }
}

module attributes {stable_mosaic.version = 11 : i64} {
  func.func @_matmul_bias_kernel(%arg0: i32, %arg1: i32, %arg2: i32, %arg3: memref<16x32xbf16, #tpu.memory_space<vmem>>, %arg4: memref<32x32xbf16, #tpu.memory_space<vmem>>, %arg5: memref<1x32xf32, #tpu.memory_space<vmem>>, %arg6: memref<16x32xbf16, #tpu.memory_space<vmem>>, %arg7: memref<16x32xf32, #tpu.memory_space<vmem>>) attributes {dimension_semantics = [#tpu.dimension_semantics<parallel>, #tpu.dimension_semantics<parallel>, #tpu.dimension_semantics<arbitrary>], iteration_bounds = array<i64: 1, 1, 1>, scalar_prefetch = 0 : i64, scratch_operands = 1 : i64, tpu.core_type = #tpu.core_type<tc>, window_params = [{transform_indices = @transform_0, window_bounds = array<i64: 16, 32>}, {transform_indices = @transform_1, window_bounds = array<i64: 32, 32>}, {transform_indices = @transform_2, window_bounds = array<i64: 1, 32>}, {transform_indices = @transform_3, window_bounds = array<i64: 16, 32>}]} {
    %c0_i32 = arith.constant 0 : i32
    %0 = arith.cmpi eq, %arg2, %c0_i32 : i32
    %1 = arith.extui %0 : i1 to i32
    %c0_i32_0 = arith.constant 0 : i32
    %2 = arith.cmpi ne, %1, %c0_i32_0 : i32
    scf.if %2 {
      %cst_10 = arith.constant 0.000000e+00 : f32
      %12 = vector.broadcast %cst_10 : f32 to vector<16x32xf32>
      %c0_11 = arith.constant 0 : index
      %c0_12 = arith.constant 0 : index
      %13 = vector.load %arg7[%c0_11, %c0_12] : memref<16x32xf32, #tpu.memory_space<vmem>>, vector<16x32xf32>
      tpu.vector_store %arg7[%c0_11, %c0_12], %12 {strides = array<i32>} : memref<16x32xf32, #tpu.memory_space<vmem>>, vector<16x32xf32>,
    } else {
    }
    %c0 = arith.constant 0 : index
    %c0_1 = arith.constant 0 : index
    %3 = vector.load %arg7[%c0, %c0_1] : memref<16x32xf32, #tpu.memory_space<vmem>>, vector<16x32xf32>
    %c0_2 = arith.constant 0 : index
    %c0_3 = arith.constant 0 : index
    %4 = vector.load %arg3[%c0_2, %c0_3] : memref<16x32xbf16, #tpu.memory_space<vmem>>, vector<16x32xbf16>
    %c0_4 = arith.constant 0 : index
    %c0_5 = arith.constant 0 : index
    %5 = vector.load %arg4[%c0_4, %c0_5] : memref<32x32xbf16, #tpu.memory_space<vmem>>, vector<32x32xbf16>
    %cst = arith.constant dense<0.000000e+00> : vector<16x32xf32>
    %6 = tpu.matmul %4, %5, %cst {dimension_numbers = #tpu.dot_dimension_numbers<[1], [0], [0], [1], [0, 0, 1, 1], [], []>} : vector<16x32xbf16>, vector<32x32xbf16>, vector<16x32xf32> -> vector<16x32xf32>
    %7 = arith.addf %3, %6 : vector<16x32xf32>
    %c0_6 = arith.constant 0 : index
    %c0_7 = arith.constant 0 : index
    %8 = vector.load %arg7[%c0_6, %c0_7] : memref<16x32xf32, #tpu.memory_space<vmem>>, vector<16x32xf32>
    tpu.vector_store %arg7[%c0_6, %c0_7], %7 {strides = array<i32>} : memref<16x32xf32, #tpu.memory_space<vmem>>, vector<16x32xf32>,
    %c0_i32_8 = arith.constant 0 : i32
    %9 = arith.cmpi eq, %arg2, %c0_i32_8 : i32
    %10 = arith.extui %9 : i1 to i32
    %c0_i32_9 = arith.constant 0 : i32
    %11 = arith.cmpi ne, %10, %c0_i32_9 : i32
    scf.if %11 {
      %c0_10 = arith.constant 0 : index
      %c0_11 = arith.constant 0 : index
      %12 = vector.load %arg7[%c0_10, %c0_11] : memref<16x32xf32, #tpu.memory_space<vmem>>, vector<16x32xf32>
      %c0_12 = arith.constant 0 : index
      %c0_13 = arith.constant 0 : index
      %13 = vector.load %arg5[%c0_12, %c0_13] : memref<1x32xf32, #tpu.memory_space<vmem>>, vector<1x32xf32>
      %14 = vector.broadcast %13 : vector<1x32xf32> to vector<16x32xf32>
      %15 = arith.addf %12, %14 : vector<16x32xf32>
      %16 = arith.truncf %15 : vector<16x32xf32> to vector<16x32xbf16>
      %c0_14 = arith.constant 0 : index
      %c0_15 = arith.constant 0 : index
      %17 = vector.load %arg6[%c0_14, %c0_15] : memref<16x32xbf16, #tpu.memory_space<vmem>>, vector<16x32xbf16>
      tpu.vector_store %arg6[%c0_14, %c0_15], %16 {strides = array<i32>} : memref<16x32xbf16, #tpu.memory_space<vmem>>, vector<16x32xbf16>,
    } else {
    }
    return
  }
  func.func @transform_0(%arg0: i32, %arg1: i32, %arg2: i32) -> (i32, i32) {
    %c0_i32 = arith.constant 0 : i32
    return %arg0, %arg2 : i32, i32
  }
  func.func @transform_1(%arg0: i32, %arg1: i32, %arg2: i32) -> (i32, i32) {
    %c0_i32 = arith.constant 0 : i32
    return %arg2, %arg1 : i32, i32
  }
  func.func @transform_2(%arg0: i32, %arg1: i32, %arg2: i32) -> (i32, i32) {
    %c0_i32 = arith.constant 0 : i32
    %c0_i32_0 = arith.constant 0 : i32
    return %c0_i32, %arg1 : i32, i32
  }
  func.func @transform_3(%arg0: i32, %arg1: i32, %arg2: i32) -> (i32, i32) {
    %c0_i32 = arith.constant 0 : i32
    return %arg0, %arg1 : i32, i32
  }
}

module attributes {stable_mosaic.version = 11 : i64} {
  func.func @_attention_kernel(%arg0: i32, %arg1: i32, %arg2: memref<1x8x32xbf16, #tpu.memory_space<vmem>>, %arg3: memref<1x8x64xbf16, #tpu.memory_space<vmem>>, %arg4: memref<1x8x32xbf16, #tpu.memory_space<vmem>>) attributes {dimension_semantics = [#tpu.dimension_semantics<parallel>, #tpu.dimension_semantics<parallel>], iteration_bounds = array<i64: 2, 1>, scalar_prefetch = 0 : i64, scratch_operands = 0 : i64, tpu.core_type = #tpu.core_type<tc>, window_params = [{transform_indices = @transform_0, window_bounds = array<i64: 1, 8, 32>}, {transform_indices = @transform_1, window_bounds = array<i64: 1, 8, 64>}, {transform_indices = @transform_2, window_bounds = array<i64: 1, 8, 32>}]} {
    %c0 = arith.constant 0 : index
    %c0_0 = arith.constant 0 : index
    %c0_1 = arith.constant 0 : index
    %0 = vector.load %arg2[%c0, %c0_0, %c0_1] : memref<1x8x32xbf16, #tpu.memory_space<vmem>>, vector<1x8x32xbf16>
    %1 = vector.shape_cast %0 : vector<1x8x32xbf16> to vector<8x32xbf16>
    %cst = arith.constant 3.535160e-01 : bf16
    %2 = vector.broadcast %cst : bf16 to vector<8x32xbf16>
    %3 = arith.mulf %1, %2 : vector<8x32xbf16>
    %4 = vector.extract_strided_slice %3 {offsets = [0, 0], sizes = [8, 8], strides = [1, 1]} : vector<8x32xbf16> to vector<8x8xbf16>
    %5 = vector.extract_strided_slice %3 {offsets = [0, 8], sizes = [8, 8], strides = [1, 1]} : vector<8x32xbf16> to vector<8x8xbf16>
    %6 = vector.extract_strided_slice %3 {offsets = [0, 16], sizes = [8, 8], strides = [1, 1]} : vector<8x32xbf16> to vector<8x8xbf16>
    %7 = vector.extract_strided_slice %3 {offsets = [0, 24], sizes = [8, 8], strides = [1, 1]} : vector<8x32xbf16> to vector<8x8xbf16>
    %8 = vector.shape_cast %4 : vector<8x8xbf16> to vector<1x8x8xbf16>
    %9 = vector.shape_cast %5 : vector<8x8xbf16> to vector<1x8x8xbf16>
    %10 = vector.shape_cast %6 : vector<8x8xbf16> to vector<1x8x8xbf16>
    %11 = vector.shape_cast %7 : vector<8x8xbf16> to vector<1x8x8xbf16>
    %12 = tpu.concatenate %8, %9, %10, %11 in 0 : vector<1x8x8xbf16>, vector<1x8x8xbf16>, vector<1x8x8xbf16>, vector<1x8x8xbf16> -> vector<4x8x8xbf16>
    %c0_2 = arith.constant 0 : index
    %c0_3 = arith.constant 0 : index
    %c0_4 = arith.constant 0 : index
    %13 = vector.load %arg3[%c0_2, %c0_3, %c0_4] : memref<1x8x64xbf16, #tpu.memory_space<vmem>>, vector<1x8x8xbf16>
    %14 = vector.shape_cast %13 : vector<1x8x8xbf16> to vector<8x8xbf16>
    %c0_5 = arith.constant 0 : index
    %c0_6 = arith.constant 0 : index
    %c8 = arith.constant 8 : index
    %15 = vector.load %arg3[%c0_5, %c0_6, %c8] : memref<1x8x64xbf16, #tpu.memory_space<vmem>>, vector<1x8x8xbf16>
    %16 = vector.shape_cast %15 : vector<1x8x8xbf16> to vector<8x8xbf16>
    %c0_7 = arith.constant 0 : index
    %c0_8 = arith.constant 0 : index
    %c16 = arith.constant 16 : index
    %17 = vector.load %arg3[%c0_7, %c0_8, %c16] : memref<1x8x64xbf16, #tpu.memory_space<vmem>>, vector<1x8x8xbf16>
    %18 = vector.shape_cast %17 : vector<1x8x8xbf16> to vector<8x8xbf16>
    %c0_9 = arith.constant 0 : index
    %c0_10 = arith.constant 0 : index
    %c24 = arith.constant 24 : index
    %19 = vector.load %arg3[%c0_9, %c0_10, %c24] : memref<1x8x64xbf16, #tpu.memory_space<vmem>>, vector<1x8x8xbf16>
    %20 = vector.shape_cast %19 : vector<1x8x8xbf16> to vector<8x8xbf16>
    %21 = vector.shape_cast %14 : vector<8x8xbf16> to vector<1x8x8xbf16>
    %22 = vector.shape_cast %16 : vector<8x8xbf16> to vector<1x8x8xbf16>
    %23 = vector.shape_cast %18 : vector<8x8xbf16> to vector<1x8x8xbf16>
    %24 = vector.shape_cast %20 : vector<8x8xbf16> to vector<1x8x8xbf16>
    %25 = tpu.concatenate %21, %22, %23, %24 in 0 : vector<1x8x8xbf16>, vector<1x8x8xbf16>, vector<1x8x8xbf16>, vector<1x8x8xbf16> -> vector<4x8x8xbf16>
    %c0_11 = arith.constant 0 : index
    %c0_12 = arith.constant 0 : index
    %c32 = arith.constant 32 : index
    %26 = vector.load %arg3[%c0_11, %c0_12, %c32] : memref<1x8x64xbf16, #tpu.memory_space<vmem>>, vector<1x8x8xbf16>
    %27 = vector.shape_cast %26 : vector<1x8x8xbf16> to vector<8x8xbf16>
    %c0_13 = arith.constant 0 : index
    %c0_14 = arith.constant 0 : index
    %c40 = arith.constant 40 : index
    %28 = vector.load %arg3[%c0_13, %c0_14, %c40] : memref<1x8x64xbf16, #tpu.memory_space<vmem>>, vector<1x8x8xbf16>
    %29 = vector.shape_cast %28 : vector<1x8x8xbf16> to vector<8x8xbf16>
    %c0_15 = arith.constant 0 : index
    %c0_16 = arith.constant 0 : index
    %c48 = arith.constant 48 : index
    %30 = vector.load %arg3[%c0_15, %c0_16, %c48] : memref<1x8x64xbf16, #tpu.memory_space<vmem>>, vector<1x8x8xbf16>
    %31 = vector.shape_cast %30 : vector<1x8x8xbf16> to vector<8x8xbf16>
    %c0_17 = arith.constant 0 : index
    %c0_18 = arith.constant 0 : index
    %c56 = arith.constant 56 : index
    %32 = vector.load %arg3[%c0_17, %c0_18, %c56] : memref<1x8x64xbf16, #tpu.memory_space<vmem>>, vector<1x8x8xbf16>
    %33 = vector.shape_cast %32 : vector<1x8x8xbf16> to vector<8x8xbf16>
    %34 = vector.shape_cast %27 : vector<8x8xbf16> to vector<1x8x8xbf16>
    %35 = vector.shape_cast %29 : vector<8x8xbf16> to vector<1x8x8xbf16>
    %36 = vector.shape_cast %31 : vector<8x8xbf16> to vector<1x8x8xbf16>
    %37 = vector.shape_cast %33 : vector<8x8xbf16> to vector<1x8x8xbf16>
    %38 = tpu.concatenate %34, %35, %36, %37 in 0 : vector<1x8x8xbf16>, vector<1x8x8xbf16>, vector<1x8x8xbf16>, vector<1x8x8xbf16> -> vector<4x8x8xbf16>
    "tpu.trace_start"() <{level = 10 : i32, message = "hqd,hkd->hqk"}> : () -> ()
    %cst_19 = arith.constant dense<0.000000e+00> : vector<4x8x8xf32>
    %39 = tpu.matmul %12, %25, %cst_19 {dimension_numbers = #tpu.dot_dimension_numbers<[2], [2], [1], [1], [0, 0, 0, 1, 1, 1], [0], [0]>} : vector<4x8x8xbf16>, vector<4x8x8xbf16>, vector<4x8x8xf32> -> vector<4x8x8xf32>
    "tpu.trace_stop"() : () -> ()
    %c8_i32 = arith.constant 8 : i32
    %40 = arith.muli %arg1, %c8_i32 : i32
    %41 = tpu.iota {dimensions = array<i32: 0>} : vector<8x8xi32>
    %42 = vector.broadcast %40 : i32 to vector<8x8xi32>
    %43 = arith.addi %42, %41 : vector<8x8xi32>
    %44 = tpu.iota {dimensions = array<i32: 1>} : vector<8x8xi32>
    %45 = arith.cmpi sgt, %44, %43 : vector<8x8xi32>
    %cst_20 = arith.constant -1.000000e+09 : f32
    %cst_21 = arith.constant 0.000000e+00 : f32
    %46 = vector.broadcast %cst_20 : f32 to vector<8x8xf32>
    %47 = vector.broadcast %cst_21 : f32 to vector<8x8xf32>
    %48 = arith.select %45, %46, %47 : vector<8x8xi1>, vector<8x8xf32>
    %49 = vector.shape_cast %48 : vector<8x8xf32> to vector<1x8x8xf32>
    %50 = vector.broadcast %49 : vector<1x8x8xf32> to vector<4x8x8xf32>
    %51 = arith.addf %39, %50 : vector<4x8x8xf32>
    %cst_22 = arith.constant dense<0xFF800000> : vector<4x8xf32>
    %52 = vector.multi_reduction <maximumf>, %51, %cst_22 [2] : vector<4x8x8xf32> to vector<4x8xf32>
    %53 = vector.shape_cast %52 : vector<4x8xf32> to vector<4x8x1xf32>
    %54 = vector.broadcast %53 : vector<4x8x1xf32> to vector<4x8x8xf32>
    %55 = arith.subf %51, %54 : vector<4x8x8xf32>
    %56 = math.exp %55 : vector<4x8x8xf32>
    %cst_23 = arith.constant dense<0.000000e+00> : vector<4x8xf32>
    %57 = vector.multi_reduction <add>, %56, %cst_23 [2] : vector<4x8x8xf32> to vector<4x8xf32>
    %58 = vector.shape_cast %57 : vector<4x8xf32> to vector<4x8x1xf32>
    %59 = tpu.reciprocal %58 {approx = true} : vector<4x8x1xf32> -> vector<4x8x1xf32>
    %60 = vector.broadcast %59 : vector<4x8x1xf32> to vector<4x8x8xf32>
    %61 = arith.mulf %56, %60 : vector<4x8x8xf32>
    %62 = arith.truncf %61 : vector<4x8x8xf32> to vector<4x8x8xbf16>
    "tpu.trace_start"() <{level = 10 : i32, message = "hqk,hkd->hqd"}> : () -> ()
    %cst_24 = arith.constant dense<0.000000e+00> : vector<4x8x8xf32>
    %63 = tpu.matmul %62, %38, %cst_24 {dimension_numbers = #tpu.dot_dimension_numbers<[2], [1], [1], [2], [0, 0, 0, 1, 1, 2], [0], [0]>} : vector<4x8x8xbf16>, vector<4x8x8xbf16>, vector<4x8x8xf32> -> vector<4x8x8xf32>
    "tpu.trace_stop"() : () -> ()
    %64 = vector.extract_strided_slice %63 {offsets = [0, 0, 0], sizes = [1, 8, 8], strides = [1, 1, 1]} : vector<4x8x8xf32> to vector<1x8x8xf32>
    %65 = vector.shape_cast %64 : vector<1x8x8xf32> to vector<8x8xf32>
    %66 = vector.extract_strided_slice %63 {offsets = [1, 0, 0], sizes = [1, 8, 8], strides = [1, 1, 1]} : vector<4x8x8xf32> to vector<1x8x8xf32>
    %67 = vector.shape_cast %66 : vector<1x8x8xf32> to vector<8x8xf32>
    %68 = vector.extract_strided_slice %63 {offsets = [2, 0, 0], sizes = [1, 8, 8], strides = [1, 1, 1]} : vector<4x8x8xf32> to vector<1x8x8xf32>
    %69 = vector.shape_cast %68 : vector<1x8x8xf32> to vector<8x8xf32>
    %70 = vector.extract_strided_slice %63 {offsets = [3, 0, 0], sizes = [1, 8, 8], strides = [1, 1, 1]} : vector<4x8x8xf32> to vector<1x8x8xf32>
    %71 = vector.shape_cast %70 : vector<1x8x8xf32> to vector<8x8xf32>
    %72 = tpu.concatenate %65, %67, %69, %71 in 1 : vector<8x8xf32>, vector<8x8xf32>, vector<8x8xf32>, vector<8x8xf32> -> vector<8x32xf32>
    %73 = arith.truncf %72 : vector<8x32xf32> to vector<8x32xbf16>
    %c0_25 = arith.constant 0 : index
    %c0_26 = arith.constant 0 : index
    %c0_27 = arith.constant 0 : index
    %74 = vector.load %arg4[%c0_25, %c0_26, %c0_27] : memref<1x8x32xbf16, #tpu.memory_space<vmem>>, vector<1x8x32xbf16>
    %75 = vector.shape_cast %74 : vector<1x8x32xbf16> to vector<8x32xbf16>
    %76 = vector.shape_cast %73 : vector<8x32xbf16> to vector<1x8x32xbf16>
    tpu.vector_store %arg4[%c0_25, %c0_26, %c0_27], %76 {strides = array<i32>} : memref<1x8x32xbf16, #tpu.memory_space<vmem>>, vector<1x8x32xbf16>,
    return
  }
  func.func @transform_0(%arg0: i32, %arg1: i32) -> (i32, i32, i32) {
    %c0_i32 = arith.constant 0 : i32
    %c0_i32_0 = arith.constant 0 : i32
    return %arg0, %arg1, %c0_i32 : i32, i32, i32
  }
  func.func @transform_1(%arg0: i32, %arg1: i32) -> (i32, i32, i32) {
    %c0_i32 = arith.constant 0 : i32
    %c0_i32_0 = arith.constant 0 : i32
    %c0_i32_1 = arith.constant 0 : i32
    return %arg0, %c0_i32, %c0_i32_0 : i32, i32, i32
  }
  func.func @transform_2(%arg0: i32, %arg1: i32) -> (i32, i32, i32) {
    %c0_i32 = arith.constant 0 : i32
    %c0_i32_0 = arith.constant 0 : i32
    return %arg0, %arg1, %c0_i32 : i32, i32, i32
  }
}

module attributes {stable_mosaic.version = 11 : i64} {
  func.func @_matmul_res_ln_kernel(%arg0: i32, %arg1: i32, %arg2: memref<16x32xbf16, #tpu.memory_space<vmem>>, %arg3: memref<32x32xbf16, #tpu.memory_space<vmem>>, %arg4: memref<1x32xf32, #tpu.memory_space<vmem>>, %arg5: memref<16x32xbf16, #tpu.memory_space<vmem>>, %arg6: memref<1x32xf32, #tpu.memory_space<vmem>>, %arg7: memref<1x32xf32, #tpu.memory_space<vmem>>, %arg8: memref<16x32xbf16, #tpu.memory_space<vmem>>, %arg9: memref<16x32xf32, #tpu.memory_space<vmem>>) attributes {dimension_semantics = [#tpu.dimension_semantics<parallel>, #tpu.dimension_semantics<arbitrary>], iteration_bounds = array<i64: 1, 1>, scalar_prefetch = 0 : i64, scratch_operands = 1 : i64, tpu.core_type = #tpu.core_type<tc>, window_params = [{transform_indices = @transform_0, window_bounds = array<i64: 16, 32>}, {transform_indices = @transform_1, window_bounds = array<i64: 32, 32>}, {pipeline_mode = #tpu.pipeline_mode<synchronous>, transform_indices = @transform_2, window_bounds = array<i64: 1, 32>}, {transform_indices = @transform_3, window_bounds = array<i64: 16, 32>}, {pipeline_mode = #tpu.pipeline_mode<synchronous>, transform_indices = @transform_4, window_bounds = array<i64: 1, 32>}, {pipeline_mode = #tpu.pipeline_mode<synchronous>, transform_indices = @transform_5, window_bounds = array<i64: 1, 32>}, {transform_indices = @transform_6, window_bounds = array<i64: 16, 32>}]} {
    %c0_i32 = arith.constant 0 : i32
    %0 = arith.cmpi eq, %arg1, %c0_i32 : i32
    %1 = arith.extui %0 : i1 to i32
    %c0_i32_0 = arith.constant 0 : i32
    %2 = arith.cmpi ne, %1, %c0_i32_0 : i32
    scf.if %2 {
      %cst_10 = arith.constant 0.000000e+00 : f32
      %12 = vector.broadcast %cst_10 : f32 to vector<16x32xf32>
      %c0_11 = arith.constant 0 : index
      %c0_12 = arith.constant 0 : index
      %13 = vector.load %arg9[%c0_11, %c0_12] : memref<16x32xf32, #tpu.memory_space<vmem>>, vector<16x32xf32>
      tpu.vector_store %arg9[%c0_11, %c0_12], %12 {strides = array<i32>} : memref<16x32xf32, #tpu.memory_space<vmem>>, vector<16x32xf32>,
    } else {
    }
    %c0 = arith.constant 0 : index
    %c0_1 = arith.constant 0 : index
    %3 = vector.load %arg9[%c0, %c0_1] : memref<16x32xf32, #tpu.memory_space<vmem>>, vector<16x32xf32>
    %c0_2 = arith.constant 0 : index
    %c0_3 = arith.constant 0 : index
    %4 = vector.load %arg2[%c0_2, %c0_3] : memref<16x32xbf16, #tpu.memory_space<vmem>>, vector<16x32xbf16>
    %c0_4 = arith.constant 0 : index
    %c0_5 = arith.constant 0 : index
    %5 = vector.load %arg3[%c0_4, %c0_5] : memref<32x32xbf16, #tpu.memory_space<vmem>>, vector<32x32xbf16>
    %cst = arith.constant dense<0.000000e+00> : vector<16x32xf32>
    %6 = tpu.matmul %4, %5, %cst {dimension_numbers = #tpu.dot_dimension_numbers<[1], [0], [0], [1], [0, 0, 1, 1], [], []>} : vector<16x32xbf16>, vector<32x32xbf16>, vector<16x32xf32> -> vector<16x32xf32>
    %7 = arith.addf %3, %6 : vector<16x32xf32>
    %c0_6 = arith.constant 0 : index
    %c0_7 = arith.constant 0 : index
    %8 = vector.load %arg9[%c0_6, %c0_7] : memref<16x32xf32, #tpu.memory_space<vmem>>, vector<16x32xf32>
    tpu.vector_store %arg9[%c0_6, %c0_7], %7 {strides = array<i32>} : memref<16x32xf32, #tpu.memory_space<vmem>>, vector<16x32xf32>,
    %c0_i32_8 = arith.constant 0 : i32
    %9 = arith.cmpi eq, %arg1, %c0_i32_8 : i32
    %10 = arith.extui %9 : i1 to i32
    %c0_i32_9 = arith.constant 0 : i32
    %11 = arith.cmpi ne, %10, %c0_i32_9 : i32
    scf.if %11 {
      %c0_10 = arith.constant 0 : index
      %c0_11 = arith.constant 0 : index
      %12 = vector.load %arg9[%c0_10, %c0_11] : memref<16x32xf32, #tpu.memory_space<vmem>>, vector<16x32xf32>
      %c0_12 = arith.constant 0 : index
      %c0_13 = arith.constant 0 : index
      %13 = vector.load %arg4[%c0_12, %c0_13] : memref<1x32xf32, #tpu.memory_space<vmem>>, vector<1x32xf32>
      %14 = vector.broadcast %13 : vector<1x32xf32> to vector<16x32xf32>
      %15 = arith.addf %12, %14 : vector<16x32xf32>
      %c0_14 = arith.constant 0 : index
      %c0_15 = arith.constant 0 : index
      %16 = vector.load %arg5[%c0_14, %c0_15] : memref<16x32xbf16, #tpu.memory_space<vmem>>, vector<16x32xbf16>
      %17 = arith.extf %16 : vector<16x32xbf16> to vector<16x32xf32>
      %18 = arith.addf %15, %17 : vector<16x32xf32>
      %cst_16 = arith.constant dense<0.000000e+00> : vector<16xf32>
      %19 = vector.multi_reduction <add>, %18, %cst_16 [1] : vector<16x32xf32> to vector<16xf32>
      %20 = vector.shape_cast %19 : vector<16xf32> to vector<16x1xf32>
      %cst_17 = arith.constant 3.200000e+01 : f32
      %21 = vector.broadcast %cst_17 : f32 to vector<16x1xf32>
      %22 = arith.divf %20, %21 : vector<16x1xf32>
      %23 = vector.broadcast %22 : vector<16x1xf32> to vector<16x32xf32>
      %24 = arith.subf %18, %23 : vector<16x32xf32>
      %25 = arith.mulf %24, %24 : vector<16x32xf32>
      %cst_18 = arith.constant dense<0.000000e+00> : vector<16xf32>
      %26 = vector.multi_reduction <add>, %25, %cst_18 [1] : vector<16x32xf32> to vector<16xf32>
      %27 = vector.shape_cast %26 : vector<16xf32> to vector<16x1xf32>
      %cst_19 = arith.constant 3.200000e+01 : f32
      %28 = vector.broadcast %cst_19 : f32 to vector<16x1xf32>
      %29 = arith.divf %27, %28 : vector<16x1xf32>
      %30 = vector.broadcast %22 : vector<16x1xf32> to vector<16x32xf32>
      %31 = arith.subf %18, %30 : vector<16x32xf32>
      %cst_20 = arith.constant 9.99999974E-6 : f32
      %32 = vector.broadcast %cst_20 : f32 to vector<16x1xf32>
      %33 = arith.addf %29, %32 : vector<16x1xf32>
      %34 = math.rsqrt %33 : vector<16x1xf32>
      %35 = vector.broadcast %34 : vector<16x1xf32> to vector<16x32xf32>
      %36 = arith.mulf %31, %35 : vector<16x32xf32>
      %c0_21 = arith.constant 0 : index
      %c0_22 = arith.constant 0 : index
      %37 = vector.load %arg6[%c0_21, %c0_22] : memref<1x32xf32, #tpu.memory_space<vmem>>, vector<1x32xf32>
      %38 = vector.broadcast %37 : vector<1x32xf32> to vector<16x32xf32>
      %39 = arith.mulf %36, %38 : vector<16x32xf32>
      %c0_23 = arith.constant 0 : index
      %c0_24 = arith.constant 0 : index
      %40 = vector.load %arg7[%c0_23, %c0_24] : memref<1x32xf32, #tpu.memory_space<vmem>>, vector<1x32xf32>
      %41 = vector.broadcast %40 : vector<1x32xf32> to vector<16x32xf32>
      %42 = arith.addf %39, %41 : vector<16x32xf32>
      %43 = arith.truncf %42 : vector<16x32xf32> to vector<16x32xbf16>
      %c0_25 = arith.constant 0 : index
      %c0_26 = arith.constant 0 : index
      %44 = vector.load %arg8[%c0_25, %c0_26] : memref<16x32xbf16, #tpu.memory_space<vmem>>, vector<16x32xbf16>
      tpu.vector_store %arg8[%c0_25, %c0_26], %43 {strides = array<i32>} : memref<16x32xbf16, #tpu.memory_space<vmem>>, vector<16x32xbf16>,
    } else {
    }
    return
  }
  func.func @transform_0(%arg0: i32, %arg1: i32) -> (i32, i32) {
    %c0_i32 = arith.constant 0 : i32
    return %arg0, %arg1 : i32, i32
  }
  func.func @transform_1(%arg0: i32, %arg1: i32) -> (i32, i32) {
    %c0_i32 = arith.constant 0 : i32
    %c0_i32_0 = arith.constant 0 : i32
    return %arg1, %c0_i32 : i32, i32
  }
  func.func @transform_2(%arg0: i32, %arg1: i32) -> (i32, i32) {
    %c0_i32 = arith.constant 0 : i32
    %c0_i32_0 = arith.constant 0 : i32
    %c0_i32_1 = arith.constant 0 : i32
    return %c0_i32, %c0_i32_0 : i32, i32
  }
  func.func @transform_3(%arg0: i32, %arg1: i32) -> (i32, i32) {
    %c0_i32 = arith.constant 0 : i32
    %c0_i32_0 = arith.constant 0 : i32
    return %arg0, %c0_i32 : i32, i32
  }
  func.func @transform_4(%arg0: i32, %arg1: i32) -> (i32, i32) {
    %c0_i32 = arith.constant 0 : i32
    %c0_i32_0 = arith.constant 0 : i32
    %c0_i32_1 = arith.constant 0 : i32
    return %c0_i32, %c0_i32_0 : i32, i32
  }
  func.func @transform_5(%arg0: i32, %arg1: i32) -> (i32, i32) {
    %c0_i32 = arith.constant 0 : i32
    %c0_i32_0 = arith.constant 0 : i32
    %c0_i32_1 = arith.constant 0 : i32
    return %c0_i32, %c0_i32_0 : i32, i32
  }
  func.func @transform_6(%arg0: i32, %arg1: i32) -> (i32, i32) {
    %c0_i32 = arith.constant 0 : i32
    %c0_i32_0 = arith.constant 0 : i32
    return %arg0, %c0_i32 : i32, i32
  }
}

module attributes {stable_mosaic.version = 11 : i64} {
  func.func @_attention_kernel(%arg0: i32, %arg1: i32, %arg2: memref<1x8x32xbf16, #tpu.memory_space<vmem>>, %arg3: memref<1x8x64xbf16, #tpu.memory_space<vmem>>, %arg4: memref<1x8x32xbf16, #tpu.memory_space<vmem>>) attributes {dimension_semantics = [#tpu.dimension_semantics<parallel>, #tpu.dimension_semantics<parallel>], iteration_bounds = array<i64: 2, 1>, scalar_prefetch = 0 : i64, scratch_operands = 0 : i64, tpu.core_type = #tpu.core_type<tc>, window_params = [{transform_indices = @transform_0, window_bounds = array<i64: 1, 8, 32>}, {transform_indices = @transform_1, window_bounds = array<i64: 1, 8, 64>}, {transform_indices = @transform_2, window_bounds = array<i64: 1, 8, 32>}]} {
    %c0 = arith.constant 0 : index
    %c0_0 = arith.constant 0 : index
    %c0_1 = arith.constant 0 : index
    %0 = vector.load %arg2[%c0, %c0_0, %c0_1] : memref<1x8x32xbf16, #tpu.memory_space<vmem>>, vector<1x8x32xbf16>
    %1 = vector.shape_cast %0 : vector<1x8x32xbf16> to vector<8x32xbf16>
    %cst = arith.constant 3.535160e-01 : bf16
    %2 = vector.broadcast %cst : bf16 to vector<8x32xbf16>
    %3 = arith.mulf %1, %2 : vector<8x32xbf16>
    %4 = vector.extract_strided_slice %3 {offsets = [0, 0], sizes = [8, 8], strides = [1, 1]} : vector<8x32xbf16> to vector<8x8xbf16>
    %5 = vector.extract_strided_slice %3 {offsets = [0, 8], sizes = [8, 8], strides = [1, 1]} : vector<8x32xbf16> to vector<8x8xbf16>
    %6 = vector.extract_strided_slice %3 {offsets = [0, 16], sizes = [8, 8], strides = [1, 1]} : vector<8x32xbf16> to vector<8x8xbf16>
    %7 = vector.extract_strided_slice %3 {offsets = [0, 24], sizes = [8, 8], strides = [1, 1]} : vector<8x32xbf16> to vector<8x8xbf16>
    %8 = vector.shape_cast %4 : vector<8x8xbf16> to vector<1x8x8xbf16>
    %9 = vector.shape_cast %5 : vector<8x8xbf16> to vector<1x8x8xbf16>
    %10 = vector.shape_cast %6 : vector<8x8xbf16> to vector<1x8x8xbf16>
    %11 = vector.shape_cast %7 : vector<8x8xbf16> to vector<1x8x8xbf16>
    %12 = tpu.concatenate %8, %9, %10, %11 in 0 : vector<1x8x8xbf16>, vector<1x8x8xbf16>, vector<1x8x8xbf16>, vector<1x8x8xbf16> -> vector<4x8x8xbf16>
    %c0_2 = arith.constant 0 : index
    %c0_3 = arith.constant 0 : index
    %c0_4 = arith.constant 0 : index
    %13 = vector.load %arg3[%c0_2, %c0_3, %c0_4] : memref<1x8x64xbf16, #tpu.memory_space<vmem>>, vector<1x8x8xbf16>
    %14 = vector.shape_cast %13 : vector<1x8x8xbf16> to vector<8x8xbf16>
    %c0_5 = arith.constant 0 : index
    %c0_6 = arith.constant 0 : index
    %c8 = arith.constant 8 : index
    %15 = vector.load %arg3[%c0_5, %c0_6, %c8] : memref<1x8x64xbf16, #tpu.memory_space<vmem>>, vector<1x8x8xbf16>
    %16 = vector.shape_cast %15 : vector<1x8x8xbf16> to vector<8x8xbf16>
    %c0_7 = arith.constant 0 : index
    %c0_8 = arith.constant 0 : index
    %c16 = arith.constant 16 : index
    %17 = vector.load %arg3[%c0_7, %c0_8, %c16] : memref<1x8x64xbf16, #tpu.memory_space<vmem>>, vector<1x8x8xbf16>
    %18 = vector.shape_cast %17 : vector<1x8x8xbf16> to vector<8x8xbf16>
    %c0_9 = arith.constant 0 : index
    %c0_10 = arith.constant 0 : index
    %c24 = arith.constant 24 : index
    %19 = vector.load %arg3[%c0_9, %c0_10, %c24] : memref<1x8x64xbf16, #tpu.memory_space<vmem>>, vector<1x8x8xbf16>
    %20 = vector.shape_cast %19 : vector<1x8x8xbf16> to vector<8x8xbf16>
    %21 = vector.shape_cast %14 : vector<8x8xbf16> to vector<1x8x8xbf16>
    %22 = vector.shape_cast %16 : vector<8x8xbf16> to vector<1x8x8xbf16>
    %23 = vector.shape_cast %18 : vector<8x8xbf16> to vector<1x8x8xbf16>
    %24 = vector.shape_cast %20 : vector<8x8xbf16> to vector<1x8x8xbf16>
    %25 = tpu.concatenate %21, %22, %23, %24 in 0 : vector<1x8x8xbf16>, vector<1x8x8xbf16>, vector<1x8x8xbf16>, vector<1x8x8xbf16> -> vector<4x8x8xbf16>
    %c0_11 = arith.constant 0 : index
    %c0_12 = arith.constant 0 : index
    %c32 = arith.constant 32 : index
    %26 = vector.load %arg3[%c0_11, %c0_12, %c32] : memref<1x8x64xbf16, #tpu.memory_space<vmem>>, vector<1x8x8xbf16>
    %27 = vector.shape_cast %26 : vector<1x8x8xbf16> to vector<8x8xbf16>
    %c0_13 = arith.constant 0 : index
    %c0_14 = arith.constant 0 : index
    %c40 = arith.constant 40 : index
    %28 = vector.load %arg3[%c0_13, %c0_14, %c40] : memref<1x8x64xbf16, #tpu.memory_space<vmem>>, vector<1x8x8xbf16>
    %29 = vector.shape_cast %28 : vector<1x8x8xbf16> to vector<8x8xbf16>
    %c0_15 = arith.constant 0 : index
    %c0_16 = arith.constant 0 : index
    %c48 = arith.constant 48 : index
    %30 = vector.load %arg3[%c0_15, %c0_16, %c48] : memref<1x8x64xbf16, #tpu.memory_space<vmem>>, vector<1x8x8xbf16>
    %31 = vector.shape_cast %30 : vector<1x8x8xbf16> to vector<8x8xbf16>
    %c0_17 = arith.constant 0 : index
    %c0_18 = arith.constant 0 : index
    %c56 = arith.constant 56 : index
    %32 = vector.load %arg3[%c0_17, %c0_18, %c56] : memref<1x8x64xbf16, #tpu.memory_space<vmem>>, vector<1x8x8xbf16>
    %33 = vector.shape_cast %32 : vector<1x8x8xbf16> to vector<8x8xbf16>
    %34 = vector.shape_cast %27 : vector<8x8xbf16> to vector<1x8x8xbf16>
    %35 = vector.shape_cast %29 : vector<8x8xbf16> to vector<1x8x8xbf16>
    %36 = vector.shape_cast %31 : vector<8x8xbf16> to vector<1x8x8xbf16>
    %37 = vector.shape_cast %33 : vector<8x8xbf16> to vector<1x8x8xbf16>
    %38 = tpu.concatenate %34, %35, %36, %37 in 0 : vector<1x8x8xbf16>, vector<1x8x8xbf16>, vector<1x8x8xbf16>, vector<1x8x8xbf16> -> vector<4x8x8xbf16>
    "tpu.trace_start"() <{level = 10 : i32, message = "hqd,hkd->hqk"}> : () -> ()
    %cst_19 = arith.constant dense<0.000000e+00> : vector<4x8x8xf32>
    %39 = tpu.matmul %12, %25, %cst_19 {dimension_numbers = #tpu.dot_dimension_numbers<[2], [2], [1], [1], [0, 0, 0, 1, 1, 1], [0], [0]>} : vector<4x8x8xbf16>, vector<4x8x8xbf16>, vector<4x8x8xf32> -> vector<4x8x8xf32>
    "tpu.trace_stop"() : () -> ()
    %cst_20 = arith.constant dense<0xFF800000> : vector<4x8xf32>
    %40 = vector.multi_reduction <maximumf>, %39, %cst_20 [2] : vector<4x8x8xf32> to vector<4x8xf32>
    %41 = vector.shape_cast %40 : vector<4x8xf32> to vector<4x8x1xf32>
    %42 = vector.broadcast %41 : vector<4x8x1xf32> to vector<4x8x8xf32>
    %43 = arith.subf %39, %42 : vector<4x8x8xf32>
    %44 = math.exp %43 : vector<4x8x8xf32>
    %cst_21 = arith.constant dense<0.000000e+00> : vector<4x8xf32>
    %45 = vector.multi_reduction <add>, %44, %cst_21 [2] : vector<4x8x8xf32> to vector<4x8xf32>
    %46 = vector.shape_cast %45 : vector<4x8xf32> to vector<4x8x1xf32>
    %47 = tpu.reciprocal %46 {approx = true} : vector<4x8x1xf32> -> vector<4x8x1xf32>
    %48 = vector.broadcast %47 : vector<4x8x1xf32> to vector<4x8x8xf32>
    %49 = arith.mulf %44, %48 : vector<4x8x8xf32>
    %50 = arith.truncf %49 : vector<4x8x8xf32> to vector<4x8x8xbf16>
    "tpu.trace_start"() <{level = 10 : i32, message = "hqk,hkd->hqd"}> : () -> ()
    %cst_22 = arith.constant dense<0.000000e+00> : vector<4x8x8xf32>
    %51 = tpu.matmul %50, %38, %cst_22 {dimension_numbers = #tpu.dot_dimension_numbers<[2], [1], [1], [2], [0, 0, 0, 1, 1, 2], [0], [0]>} : vector<4x8x8xbf16>, vector<4x8x8xbf16>, vector<4x8x8xf32> -> vector<4x8x8xf32>
    "tpu.trace_stop"() : () -> ()
    %52 = vector.extract_strided_slice %51 {offsets = [0, 0, 0], sizes = [1, 8, 8], strides = [1, 1, 1]} : vector<4x8x8xf32> to vector<1x8x8xf32>
    %53 = vector.shape_cast %52 : vector<1x8x8xf32> to vector<8x8xf32>
    %54 = vector.extract_strided_slice %51 {offsets = [1, 0, 0], sizes = [1, 8, 8], strides = [1, 1, 1]} : vector<4x8x8xf32> to vector<1x8x8xf32>
    %55 = vector.shape_cast %54 : vector<1x8x8xf32> to vector<8x8xf32>
    %56 = vector.extract_strided_slice %51 {offsets = [2, 0, 0], sizes = [1, 8, 8], strides = [1, 1, 1]} : vector<4x8x8xf32> to vector<1x8x8xf32>
    %57 = vector.shape_cast %56 : vector<1x8x8xf32> to vector<8x8xf32>
    %58 = vector.extract_strided_slice %51 {offsets = [3, 0, 0], sizes = [1, 8, 8], strides = [1, 1, 1]} : vector<4x8x8xf32> to vector<1x8x8xf32>
    %59 = vector.shape_cast %58 : vector<1x8x8xf32> to vector<8x8xf32>
    %60 = tpu.concatenate %53, %55, %57, %59 in 1 : vector<8x8xf32>, vector<8x8xf32>, vector<8x8xf32>, vector<8x8xf32> -> vector<8x32xf32>
    %61 = arith.truncf %60 : vector<8x32xf32> to vector<8x32xbf16>
    %c0_23 = arith.constant 0 : index
    %c0_24 = arith.constant 0 : index
    %c0_25 = arith.constant 0 : index
    %62 = vector.load %arg4[%c0_23, %c0_24, %c0_25] : memref<1x8x32xbf16, #tpu.memory_space<vmem>>, vector<1x8x32xbf16>
    %63 = vector.shape_cast %62 : vector<1x8x32xbf16> to vector<8x32xbf16>
    %64 = vector.shape_cast %61 : vector<8x32xbf16> to vector<1x8x32xbf16>
    tpu.vector_store %arg4[%c0_23, %c0_24, %c0_25], %64 {strides = array<i32>} : memref<1x8x32xbf16, #tpu.memory_space<vmem>>, vector<1x8x32xbf16>,
    return
  }
  func.func @transform_0(%arg0: i32, %arg1: i32) -> (i32, i32, i32) {
    %c0_i32 = arith.constant 0 : i32
    %c0_i32_0 = arith.constant 0 : i32
    return %arg0, %arg1, %c0_i32 : i32, i32, i32
  }
  func.func @transform_1(%arg0: i32, %arg1: i32) -> (i32, i32, i32) {
    %c0_i32 = arith.constant 0 : i32
    %c0_i32_0 = arith.constant 0 : i32
    %c0_i32_1 = arith.constant 0 : i32
    return %arg0, %c0_i32, %c0_i32_0 : i32, i32, i32
  }
  func.func @transform_2(%arg0: i32, %arg1: i32) -> (i32, i32, i32) {
    %c0_i32 = arith.constant 0 : i32
    %c0_i32_0 = arith.constant 0 : i32
    return %arg0, %arg1, %c0_i32 : i32, i32, i32
  }
}

module attributes {stable_mosaic.version = 11 : i64} {
  func.func @_ffn_resident_kernel(%arg0: i32, %arg1: memref<16x32xbf16, #tpu.memory_space<vmem>>, %arg2: memref<32x64xbf16, #tpu.memory_space<vmem>>, %arg3: memref<1x64xf32, #tpu.memory_space<vmem>>, %arg4: memref<64x32xbf16, #tpu.memory_space<vmem>>, %arg5: memref<1x32xf32, #tpu.memory_space<vmem>>, %arg6: memref<1x32xf32, #tpu.memory_space<vmem>>, %arg7: memref<1x32xf32, #tpu.memory_space<vmem>>, %arg8: memref<16x32xbf16, #tpu.memory_space<vmem>>) attributes {dimension_semantics = [#tpu.dimension_semantics<parallel>], iteration_bounds = array<i64: 1>, scalar_prefetch = 0 : i64, scratch_operands = 0 : i64, tpu.core_type = #tpu.core_type<tc>, window_params = [{transform_indices = @transform_0, window_bounds = array<i64: 16, 32>}, {pipeline_mode = #tpu.pipeline_mode<synchronous>, transform_indices = @transform_1, window_bounds = array<i64: 32, 64>}, {pipeline_mode = #tpu.pipeline_mode<synchronous>, transform_indices = @transform_2, window_bounds = array<i64: 1, 64>}, {pipeline_mode = #tpu.pipeline_mode<synchronous>, transform_indices = @transform_3, window_bounds = array<i64: 64, 32>}, {pipeline_mode = #tpu.pipeline_mode<synchronous>, transform_indices = @transform_4, window_bounds = array<i64: 1, 32>}, {pipeline_mode = #tpu.pipeline_mode<synchronous>, transform_indices = @transform_5, window_bounds = array<i64: 1, 32>}, {pipeline_mode = #tpu.pipeline_mode<synchronous>, transform_indices = @transform_6, window_bounds = array<i64: 1, 32>}, {transform_indices = @transform_7, window_bounds = array<i64: 16, 32>}]} {
    %c0 = arith.constant 0 : index
    %c0_0 = arith.constant 0 : index
    %0 = vector.load %arg1[%c0, %c0_0] : memref<16x32xbf16, #tpu.memory_space<vmem>>, vector<16x32xbf16>
    %c0_1 = arith.constant 0 : index
    %c0_2 = arith.constant 0 : index
    %1 = vector.load %arg2[%c0_1, %c0_2] : memref<32x64xbf16, #tpu.memory_space<vmem>>, vector<32x64xbf16>
    %cst = arith.constant dense<0.000000e+00> : vector<16x64xf32>
    %2 = tpu.matmul %0, %1, %cst {dimension_numbers = #tpu.dot_dimension_numbers<[1], [0], [0], [1], [0, 0, 1, 1], [], []>} : vector<16x32xbf16>, vector<32x64xbf16>, vector<16x64xf32> -> vector<16x64xf32>
    %c0_3 = arith.constant 0 : index
    %c0_4 = arith.constant 0 : index
    %3 = vector.load %arg3[%c0_3, %c0_4] : memref<1x64xf32, #tpu.memory_space<vmem>>, vector<1x64xf32>
    %4 = vector.broadcast %3 : vector<1x64xf32> to vector<16x64xf32>
    %5 = arith.addf %2, %4 : vector<16x64xf32>
    %cst_5 = arith.constant 0.000000e+00 : f32
    %6 = vector.broadcast %cst_5 : f32 to vector<16x64xf32>
    %7 = arith.maximumf %5, %6 : vector<16x64xf32>
    %8 = arith.truncf %7 : vector<16x64xf32> to vector<16x64xbf16>
    %c0_6 = arith.constant 0 : index
    %c0_7 = arith.constant 0 : index
    %9 = vector.load %arg4[%c0_6, %c0_7] : memref<64x32xbf16, #tpu.memory_space<vmem>>, vector<64x32xbf16>
    %cst_8 = arith.constant dense<0.000000e+00> : vector<16x32xf32>
    %10 = tpu.matmul %8, %9, %cst_8 {dimension_numbers = #tpu.dot_dimension_numbers<[1], [0], [0], [1], [0, 0, 1, 1], [], []>} : vector<16x64xbf16>, vector<64x32xbf16>, vector<16x32xf32> -> vector<16x32xf32>
    %c0_9 = arith.constant 0 : index
    %c0_10 = arith.constant 0 : index
    %11 = vector.load %arg5[%c0_9, %c0_10] : memref<1x32xf32, #tpu.memory_space<vmem>>, vector<1x32xf32>
    %12 = vector.broadcast %11 : vector<1x32xf32> to vector<16x32xf32>
    %13 = arith.addf %10, %12 : vector<16x32xf32>
    %c0_11 = arith.constant 0 : index
    %c0_12 = arith.constant 0 : index
    %14 = vector.load %arg1[%c0_11, %c0_12] : memref<16x32xbf16, #tpu.memory_space<vmem>>, vector<16x32xbf16>
    %15 = arith.extf %14 : vector<16x32xbf16> to vector<16x32xf32>
    %16 = arith.addf %13, %15 : vector<16x32xf32>
    %cst_13 = arith.constant dense<0.000000e+00> : vector<16xf32>
    %17 = vector.multi_reduction <add>, %16, %cst_13 [1] : vector<16x32xf32> to vector<16xf32>
    %18 = vector.shape_cast %17 : vector<16xf32> to vector<16x1xf32>
    %cst_14 = arith.constant 3.200000e+01 : f32
    %19 = vector.broadcast %cst_14 : f32 to vector<16x1xf32>
    %20 = arith.divf %18, %19 : vector<16x1xf32>
    %21 = vector.broadcast %20 : vector<16x1xf32> to vector<16x32xf32>
    %22 = arith.subf %16, %21 : vector<16x32xf32>
    %23 = arith.mulf %22, %22 : vector<16x32xf32>
    %cst_15 = arith.constant dense<0.000000e+00> : vector<16xf32>
    %24 = vector.multi_reduction <add>, %23, %cst_15 [1] : vector<16x32xf32> to vector<16xf32>
    %25 = vector.shape_cast %24 : vector<16xf32> to vector<16x1xf32>
    %cst_16 = arith.constant 3.200000e+01 : f32
    %26 = vector.broadcast %cst_16 : f32 to vector<16x1xf32>
    %27 = arith.divf %25, %26 : vector<16x1xf32>
    %28 = vector.broadcast %20 : vector<16x1xf32> to vector<16x32xf32>
    %29 = arith.subf %16, %28 : vector<16x32xf32>
    %cst_17 = arith.constant 9.99999974E-6 : f32
    %30 = vector.broadcast %cst_17 : f32 to vector<16x1xf32>
    %31 = arith.addf %27, %30 : vector<16x1xf32>
    %32 = math.rsqrt %31 : vector<16x1xf32>
    %33 = vector.broadcast %32 : vector<16x1xf32> to vector<16x32xf32>
    %34 = arith.mulf %29, %33 : vector<16x32xf32>
    %c0_18 = arith.constant 0 : index
    %c0_19 = arith.constant 0 : index
    %35 = vector.load %arg6[%c0_18, %c0_19] : memref<1x32xf32, #tpu.memory_space<vmem>>, vector<1x32xf32>
    %36 = vector.broadcast %35 : vector<1x32xf32> to vector<16x32xf32>
    %37 = arith.mulf %34, %36 : vector<16x32xf32>
    %c0_20 = arith.constant 0 : index
    %c0_21 = arith.constant 0 : index
    %38 = vector.load %arg7[%c0_20, %c0_21] : memref<1x32xf32, #tpu.memory_space<vmem>>, vector<1x32xf32>
    %39 = vector.broadcast %38 : vector<1x32xf32> to vector<16x32xf32>
    %40 = arith.addf %37, %39 : vector<16x32xf32>
    %41 = arith.truncf %40 : vector<16x32xf32> to vector<16x32xbf16>
    %c0_22 = arith.constant 0 : index
    %c0_23 = arith.constant 0 : index
    %42 = vector.load %arg8[%c0_22, %c0_23] : memref<16x32xbf16, #tpu.memory_space<vmem>>, vector<16x32xbf16>
    tpu.vector_store %arg8[%c0_22, %c0_23], %41 {strides = array<i32>} : memref<16x32xbf16, #tpu.memory_space<vmem>>, vector<16x32xbf16>,
    return
  }
  func.func @transform_0(%arg0: i32) -> (i32, i32) {
    %c0_i32 = arith.constant 0 : i32
    %c0_i32_0 = arith.constant 0 : i32
    return %arg0, %c0_i32 : i32, i32
  }
  func.func @transform_1(%arg0: i32) -> (i32, i32) {
    %c0_i32 = arith.constant 0 : i32
    %c0_i32_0 = arith.constant 0 : i32
    %c0_i32_1 = arith.constant 0 : i32
    return %c0_i32, %c0_i32_0 : i32, i32
  }
  func.func @transform_2(%arg0: i32) -> (i32, i32) {
    %c0_i32 = arith.constant 0 : i32
    %c0_i32_0 = arith.constant 0 : i32
    %c0_i32_1 = arith.constant 0 : i32
    return %c0_i32, %c0_i32_0 : i32, i32
  }
  func.func @transform_3(%arg0: i32) -> (i32, i32) {
    %c0_i32 = arith.constant 0 : i32
    %c0_i32_0 = arith.constant 0 : i32
    %c0_i32_1 = arith.constant 0 : i32
    return %c0_i32, %c0_i32_0 : i32, i32
  }
  func.func @transform_4(%arg0: i32) -> (i32, i32) {
    %c0_i32 = arith.constant 0 : i32
    %c0_i32_0 = arith.constant 0 : i32
    %c0_i32_1 = arith.constant 0 : i32
    return %c0_i32, %c0_i32_0 : i32, i32
  }
  func.func @transform_5(%arg0: i32) -> (i32, i32) {
    %c0_i32 = arith.constant 0 : i32
    %c0_i32_0 = arith.constant 0 : i32
    %c0_i32_1 = arith.constant 0 : i32
    return %c0_i32, %c0_i32_0 : i32, i32
  }
  func.func @transform_6(%arg0: i32) -> (i32, i32) {
    %c0_i32 = arith.constant 0 : i32
    %c0_i32_0 = arith.constant 0 : i32
    %c0_i32_1 = arith.constant 0 : i32
    return %c0_i32, %c0_i32_0 : i32, i32
  }
  func.func @transform_7(%arg0: i32) -> (i32, i32) {
    %c0_i32 = arith.constant 0 : i32
    %c0_i32_0 = arith.constant 0 : i32
    return %arg0, %c0_i32 : i32, i32
  }
}

module attributes {stable_mosaic.version = 11 : i64} {
  func.func @_matmul_bias_kernel(%arg0: i32, %arg1: i32, %arg2: i32, %arg3: memref<16x32xbf16, #tpu.memory_space<vmem>>, %arg4: memref<32x50xbf16, #tpu.memory_space<vmem>>, %arg5: memref<1x50xf32, #tpu.memory_space<vmem>>, %arg6: memref<16x50xf32, #tpu.memory_space<vmem>>, %arg7: memref<16x50xf32, #tpu.memory_space<vmem>>) attributes {dimension_semantics = [#tpu.dimension_semantics<parallel>, #tpu.dimension_semantics<parallel>, #tpu.dimension_semantics<arbitrary>], iteration_bounds = array<i64: 1, 1, 1>, scalar_prefetch = 0 : i64, scratch_operands = 1 : i64, tpu.core_type = #tpu.core_type<tc>, window_params = [{transform_indices = @transform_0, window_bounds = array<i64: 16, 32>}, {transform_indices = @transform_1, window_bounds = array<i64: 32, 50>}, {transform_indices = @transform_2, window_bounds = array<i64: 1, 50>}, {transform_indices = @transform_3, window_bounds = array<i64: 16, 50>}]} {
    %c0_i32 = arith.constant 0 : i32
    %0 = arith.cmpi eq, %arg2, %c0_i32 : i32
    %1 = arith.extui %0 : i1 to i32
    %c0_i32_0 = arith.constant 0 : i32
    %2 = arith.cmpi ne, %1, %c0_i32_0 : i32
    scf.if %2 {
      %cst_10 = arith.constant 0.000000e+00 : f32
      %12 = vector.broadcast %cst_10 : f32 to vector<16x50xf32>
      %c0_11 = arith.constant 0 : index
      %c0_12 = arith.constant 0 : index
      %13 = vector.load %arg7[%c0_11, %c0_12] : memref<16x50xf32, #tpu.memory_space<vmem>>, vector<16x50xf32>
      tpu.vector_store %arg7[%c0_11, %c0_12], %12 {strides = array<i32>} : memref<16x50xf32, #tpu.memory_space<vmem>>, vector<16x50xf32>,
    } else {
    }
    %c0 = arith.constant 0 : index
    %c0_1 = arith.constant 0 : index
    %3 = vector.load %arg7[%c0, %c0_1] : memref<16x50xf32, #tpu.memory_space<vmem>>, vector<16x50xf32>
    %c0_2 = arith.constant 0 : index
    %c0_3 = arith.constant 0 : index
    %4 = vector.load %arg3[%c0_2, %c0_3] : memref<16x32xbf16, #tpu.memory_space<vmem>>, vector<16x32xbf16>
    %c0_4 = arith.constant 0 : index
    %c0_5 = arith.constant 0 : index
    %5 = vector.load %arg4[%c0_4, %c0_5] : memref<32x50xbf16, #tpu.memory_space<vmem>>, vector<32x50xbf16>
    %cst = arith.constant dense<0.000000e+00> : vector<16x50xf32>
    %6 = tpu.matmul %4, %5, %cst {dimension_numbers = #tpu.dot_dimension_numbers<[1], [0], [0], [1], [0, 0, 1, 1], [], []>} : vector<16x32xbf16>, vector<32x50xbf16>, vector<16x50xf32> -> vector<16x50xf32>
    %7 = arith.addf %3, %6 : vector<16x50xf32>
    %c0_6 = arith.constant 0 : index
    %c0_7 = arith.constant 0 : index
    %8 = vector.load %arg7[%c0_6, %c0_7] : memref<16x50xf32, #tpu.memory_space<vmem>>, vector<16x50xf32>
    tpu.vector_store %arg7[%c0_6, %c0_7], %7 {strides = array<i32>} : memref<16x50xf32, #tpu.memory_space<vmem>>, vector<16x50xf32>,
    %c0_i32_8 = arith.constant 0 : i32
    %9 = arith.cmpi eq, %arg2, %c0_i32_8 : i32
    %10 = arith.extui %9 : i1 to i32
    %c0_i32_9 = arith.constant 0 : i32
    %11 = arith.cmpi ne, %10, %c0_i32_9 : i32
    scf.if %11 {
      %c0_10 = arith.constant 0 : index
      %c0_11 = arith.constant 0 : index
      %12 = vector.load %arg7[%c0_10, %c0_11] : memref<16x50xf32, #tpu.memory_space<vmem>>, vector<16x50xf32>
      %c0_12 = arith.constant 0 : index
      %c0_13 = arith.constant 0 : index
      %13 = vector.load %arg5[%c0_12, %c0_13] : memref<1x50xf32, #tpu.memory_space<vmem>>, vector<1x50xf32>
      %14 = vector.broadcast %13 : vector<1x50xf32> to vector<16x50xf32>
      %15 = arith.addf %12, %14 : vector<16x50xf32>
      %c0_14 = arith.constant 0 : index
      %c0_15 = arith.constant 0 : index
      %16 = vector.load %arg6[%c0_14, %c0_15] : memref<16x50xf32, #tpu.memory_space<vmem>>, vector<16x50xf32>
      tpu.vector_store %arg6[%c0_14, %c0_15], %15 {strides = array<i32>} : memref<16x50xf32, #tpu.memory_space<vmem>>, vector<16x50xf32>,
    } else {
    }
    return
  }
  func.func @transform_0(%arg0: i32, %arg1: i32, %arg2: i32) -> (i32, i32) {
    %c0_i32 = arith.constant 0 : i32
    return %arg0, %arg2 : i32, i32
  }
  func.func @transform_1(%arg0: i32, %arg1: i32, %arg2: i32) -> (i32, i32) {
    %c0_i32 = arith.constant 0 : i32
    return %arg2, %arg1 : i32, i32
  }
  func.func @transform_2(%arg0: i32, %arg1: i32, %arg2: i32) -> (i32, i32) {
    %c0_i32 = arith.constant 0 : i32
    %c0_i32_0 = arith.constant 0 : i32
    return %c0_i32, %arg1 : i32, i32
  }
  func.func @transform_3(%arg0: i32, %arg1: i32, %arg2: i32) -> (i32, i32) {
    %c0_i32 = arith.constant 0 : i32
    return %arg0, %arg1 : i32, i32
  }
}

</mosaic_0001>

<bundles_post_ra>
// kernel: transformer_decoder_forward.20
= control target key start
LH: loop header
LB: loop body
LE: loop exit
PB: predicated region body
PF: predicated region fallthrough
CT: control target
= control target key end

     0   :  { %vm19_vm0 = vcmask 523264   ;;  %v151_v0 = vmov 0.0   ;;  %vm152_vm1 = vmmov 0   ;;  %vm47_vm2 = vcmask 261120   ;;  %s195_s1 = inlined_call_operand.vmem [shape: bf16[32,64], index: 1, kind: input, shape index: {}]   ;;  %s196_s0 = inlined_call_operand.vmem [shape: bf16[16,32], index: 0, kind: input, shape index: {}]   ;;  %s197_s2 = inlined_call_operand.vmem [shape: f32[1,64], index: 2, kind: input, shape index: {}]   ;;  %s198_s3 = inlined_call_operand.vmem [shape: bf16[16,64], index: 3, kind: output, shape index: {}]  }
   0x1   :  { %138 = vmatprep.subr.bf16.mxu0 %v151_v0  ;;  %v148_v1 = vld [vmem:[%s195_s1 + $0x8] sm:$0xff]   ;;  %142 = vmatprep.mubr.msk.bf16.mxu0 %vm152_vm1, %v151_v0  ;;  %20 = vst.msk [vmem:[#allocation2] sm:$0xff] %vm19_vm0, %v151_v0  ;;  %21 = vst.msk [vmem:[#allocation2 + $0x8] sm:$0xff] %vm19_vm0, %v151_v0  ;;  %v149_v2 = vld [vmem:[%s195_s1] sm:$0xff]   ;;  %vm119_vm3 = vcmask 519168  }
   0x2   :  { %139 = vmatpush3.bf16.msra.mxu0 %v148_v1  ;;  %v150_v3 = vld [vmem:[%s196_s0] sm:$0xff]  }
   0x3   :  { %140 = vmatprep.subr.bf16.mxu0 %v151_v0  ;;  %v130_v12 = vld [vmem:[%s197_s2] ss:$0 sm:$0xff] }
   0x6   :  { %141 = vmatpush3.bf16.msra.mxu0 %v149_v2 }
   0x8   :  { %v22_v4 = vld [vmem:[#allocation2] sm:$0xff]  ;;  %v23_v8 = vld [vmem:[#allocation2 + $0x8] sm:$0xff] }
   0x9   :  { %143 = vmatmul.mubr.msk.bf16.vlgmr.msra.gmra.mxu0 %vm47_vm2, %v150_v3 }
  0xc9   :  { %v85_v5 = vpop.f32.mrf.mxu0 }
  0xca   :  { %v92_v6 = vadd.f32 %v85_v5, %v22_v4 }
  0xcb   :  { %v144_v7 = vpop.f32.mrf.mxu0 }
  0xcc   :  { %95 = vst.msk [vmem:[#allocation2] sm:$0xff] %vm19_vm0, %v92_v6 }
  0xcd   :  { %v88_v9 = vpop.f32.mrf.mxu0 }
  0xce   :  { %v93_v10 = vadd.f32 %v88_v9, %v23_v8 }
  0xcf   :  { %v145_v11 = vpop.f32.mrf.mxu0 }
  0xd0   :  { %96 = vst.msk [vmem:[#allocation2 + $0x8] sm:$0xff] %vm19_vm0, %v93_v10 }
  0xd3   :  { %v100_v13 = vld [vmem:[#allocation2] sm:$0xff] }
  0xd4   :  { %v109_v14 = vadd.f32 %v130_v12, %v100_v13 }
  0xd6   :  { %v133_v15 = vpack.c.bf16 %v109_v14, %v109_v14 }
  0xd7   :  { %v101_v16 = vld [vmem:[#allocation2 + $0x8] sm:$0xff] }
  0xd8   :  { %120 = vst.msk [vmem:[%s198_s3] sm:$0xf] %vm119_vm3, %v133_v15  ;;  %v110_v17 = vadd.f32 %v130_v12, %v101_v16 }
  0xda   :  { %v134_v18 = vpack.c.bf16 %v110_v17, %v110_v17 }
  0xdc   :  { %121 = vst.msk [vmem:[%s198_s3 + $0x4] sm:$0xf] %vm119_vm3, %v134_v18 }

// kernel: transformer_decoder_forward.22
= control target key start
LH: loop header
LB: loop body
LE: loop exit
PB: predicated region body
PF: predicated region fallthrough
CT: control target
= control target key end

     0   :  { %vm28_vm0 = vcmask 261120   ;;  %v220_v0 = vmov 0.0   ;;  %vm221_vm1 = vmmov 0   ;;  %vm178_vm2 = vcmask 257024   ;;  %s293_s1 = inlined_call_operand.vmem [shape: bf16[32,32], index: 1, kind: input, shape index: {}]   ;;  %s294_s0 = inlined_call_operand.vmem [shape: bf16[16,32], index: 0, kind: input, shape index: {}]   ;;  %s295_s3 = inlined_call_operand.vmem [shape: bf16[16,32], index: 3, kind: input, shape index: {}]   ;;  %s296_s2 = inlined_call_operand.vmem [shape: f32[1,32], index: 2, kind: input, shape index: {}]   ;;  %s297_s4 = inlined_call_operand.vmem [shape: f32[1,32], index: 4, kind: input, shape index: {}]   ;;  %s298_s5 = inlined_call_operand.vmem [shape: f32[1,32], index: 5, kind: input, shape index: {}]   ;;  %s299_s6 = inlined_call_operand.vmem [shape: bf16[16,32], index: 6, kind: output, shape index: {}]  }
   0x1   :  { %203 = vmatprep.subr.bf16.mxu0 %v220_v0  ;;  %v213_v1 = vld [vmem:[%s293_s1 + $0x8] sm:$0xff]   ;;  %207 = vmatprep.mubr.msk.bf16.mxu0 %vm221_vm1, %v220_v0  ;;  %29 = vst.msk [vmem:[#allocation2] sm:$0xff] %vm28_vm0, %v220_v0  ;;  %30 = vst.msk [vmem:[#allocation2 + $0x8] sm:$0xff] %vm28_vm0, %v220_v0  ;;  %v214_v2 = vld [vmem:[%s293_s1] sm:$0xff]  }
   0x2   :  { %204 = vmatpush3.bf16.msra.mxu0 %v213_v1  ;;  %v215_v3 = vld [vmem:[%s294_s0] sm:$0xff]  }
   0x3   :  { %205 = vmatprep.subr.bf16.mxu0 %v220_v0  ;;  %v197_v12 = vld [vmem:[%s295_s3] sm:$0xff]  }
   0x4   :  { %v189_v13 = vld [vmem:[%s296_s2] ss:$0 sm:$0xff]  ;;  %v198_v14 = vunpack.c.l.bf16 %v197_v12  ;;  %v199_v18 = vunpack.c.h.bf16 %v197_v12 }
   0x5   :  { %v190_v41 = vld [vmem:[%s297_s4] ss:$0 sm:$0xff] }
   0x6   :  { %206 = vmatpush3.bf16.msra.mxu0 %v214_v2  ;;  %v191_v43 = vld [vmem:[%s298_s5] ss:$0 sm:$0xff] }
   0x8   :  { %v31_v4 = vld [vmem:[#allocation2] sm:$0xff]  ;;  %v32_v8 = vld [vmem:[#allocation2 + $0x8] sm:$0xff] }
   0x9   :  { %208 = vmatmul.mubr.msk.bf16.vlgmr.msra.gmra.mxu0 %vm28_vm0, %v215_v3 }
  0xc9   :  { %v94_v5 = vpop.f32.mrf.mxu0 }
  0xca   :  { %v101_v6 = vadd.f32 %v94_v5, %v31_v4 }
  0xcb   :  { %v209_v7 = vpop.f32.mrf.mxu0 }
  0xcc   :  { %103 = vst.msk [vmem:[#allocation2] sm:$0xff] %vm28_vm0, %v101_v6 }
  0xcd   :  { %v97_v9 = vpop.f32.mrf.mxu0 }
  0xce   :  { %v102_v10 = vadd.f32 %v97_v9, %v32_v8 }
  0xcf   :  { %v210_v11 = vpop.f32.mrf.mxu0 }
  0xd0   :  { %104 = vst.msk [vmem:[#allocation2 + $0x8] sm:$0xff] %vm28_vm0, %v102_v10 }
  0xd3   :  { %v108_v15 = vld [vmem:[#allocation2] sm:$0xff] }
  0xd4   :  { %v117_v16 = vadd.f32 %v189_v13, %v108_v15 }
  0xd6   :  { %v123_v17 = vadd.f32 %v198_v14, %v117_v16 }
  0xd7   :  { %v109_v19 = vld [vmem:[#allocation2 + $0x8] sm:$0xff] }
  0xd8   :  { %v125_v20 = vsel %vm28_vm0, %v123_v17, 0.0  ;;  %v118_v21 = vadd.f32 %v189_v13, %v109_v19 }
  0xd9   :  { %126 = vadd.xlane.f32.xlu0 %v125_v20 }
  0xda   :  { %v124_v22 = vadd.f32 %v199_v18, %v118_v21 }
  0xdc   :  { %v128_v23 = vsel %vm28_vm0, %v124_v22, 0.0 }
  0xdd   :  { %129 = vadd.xlane.f32.xlu0 %v128_v23 }
 0x162   :  { %v127_v24 = vpop.xlane.xlu0 %126 }
 0x163   :  { %v132_v25 = vmul.f32 0.03125, %v127_v24 }
 0x165   :  { %v134_v26 = vsub.f32 %v123_v17, %v132_v25 }
 0x166   :  { %v130_v27 = vpop.xlane.xlu0 %129 }
 0x167   :  { %v133_v28 = vmul.f32 0.03125, %v130_v27  ;;  %v136_v29 = vmul.f32 %v134_v26, %v134_v26 }
 0x169   :  { %v135_v30 = vsub.f32 %v124_v22, %v133_v28  ;;  %v138_v31 = vsel %vm28_vm0, %v136_v29, 0.0 }
 0x16a   :  { %139 = vadd.xlane.f32.xlu1 %v138_v31 }
 0x16b   :  { %v137_v32 = vmul.f32 %v135_v30, %v135_v30 }
 0x16d   :  { %v141_v33 = vsel %vm28_vm0, %v137_v32, 0.0 }
 0x16e   :  { %142 = vadd.xlane.f32.xlu1 %v141_v33 }
 0x1f3   :  { %v140_v34 = vpop.xlane.xlu1 %139 }
 0x1f4   :  { %v144_v35 = vmul.f32 0.03125, %v140_v34 }
 0x1f6   :  { %v146_v36 = vadd.f32 1e-05, %v144_v35 }
 0x1f7   :  { %v143_v37 = vpop.xlane.xlu1 %142 }
 0x1f8   :  { %216 = vrsqrt.f32 %v146_v36  ;;  %v145_v38 = vmul.f32 0.03125, %v143_v37 }
 0x1fa   :  { %v147_v39 = vadd.f32 1e-05, %v145_v38 }
 0x1fc   :  { %218 = vrsqrt.f32 %v147_v39 }
 0x205   :  { %v217_v40 = vpop.eup %216 }
 0x206   :  { %v150_v42 = vmul.f32 %v217_v40, %v134_v26 }
 0x208   :  { %v159_v44 = vmul.f32 %v190_v41, %v150_v42 }
 0x209   :  { %v219_v45 = vpop.eup %218 }
 0x20a   :  { %v168_v46 = vadd.f32 %v191_v43, %v159_v44  ;;  %v151_v47 = vmul.f32 %v219_v45, %v135_v30 }
 0x20c   :  { %v194_v48 = vpack.c.bf16 %v168_v46, %v168_v46  ;;  %v160_v49 = vmul.f32 %v190_v41, %v151_v47 }
 0x20e   :  { %179 = vst.msk [vmem:[%s299_s6] sm:$0xf] %vm178_vm2, %v194_v48  ;;  %v169_v50 = vadd.f32 %v191_v43, %v160_v49 }
 0x210   :  { %v195_v51 = vpack.c.bf16 %v169_v50, %v169_v50 }
 0x212   :  { %180 = vst.msk [vmem:[%s299_s6 + $0x4] sm:$0xf] %vm178_vm2, %v195_v51 }

// kernel: transformer_decoder_forward.19
= control target key start
LH: loop header
LB: loop body
LE: loop exit
PB: predicated region body
PF: predicated region fallthrough
CT: control target
= control target key end

     0   :  { %vm19_vm0 = vcmask 261120   ;;  %v150_v0 = vmov 0.0   ;;  %vm151_vm1 = vmmov 0   ;;  %vm118_vm2 = vcmask 257024   ;;  %s195_s1 = inlined_call_operand.vmem [shape: bf16[32,32], index: 1, kind: input, shape index: {}]   ;;  %s196_s0 = inlined_call_operand.vmem [shape: bf16[16,32], index: 0, kind: input, shape index: {}]   ;;  %s197_s2 = inlined_call_operand.vmem [shape: f32[1,32], index: 2, kind: input, shape index: {}]   ;;  %s198_s3 = inlined_call_operand.vmem [shape: bf16[16,32], index: 3, kind: output, shape index: {}]  }
   0x1   :  { %137 = vmatprep.subr.bf16.mxu0 %v150_v0  ;;  %v147_v1 = vld [vmem:[%s195_s1 + $0x8] sm:$0xff]   ;;  %141 = vmatprep.mubr.msk.bf16.mxu0 %vm151_vm1, %v150_v0  ;;  %20 = vst.msk [vmem:[#allocation2] sm:$0xff] %vm19_vm0, %v150_v0  ;;  %21 = vst.msk [vmem:[#allocation2 + $0x8] sm:$0xff] %vm19_vm0, %v150_v0  ;;  %v148_v2 = vld [vmem:[%s195_s1] sm:$0xff]  }
   0x2   :  { %138 = vmatpush3.bf16.msra.mxu0 %v147_v1  ;;  %v149_v3 = vld [vmem:[%s196_s0] sm:$0xff]  }
   0x3   :  { %139 = vmatprep.subr.bf16.mxu0 %v150_v0  ;;  %v129_v12 = vld [vmem:[%s197_s2] ss:$0 sm:$0xff] }
   0x6   :  { %140 = vmatpush3.bf16.msra.mxu0 %v148_v2 }
   0x8   :  { %v22_v4 = vld [vmem:[#allocation2] sm:$0xff]  ;;  %v23_v8 = vld [vmem:[#allocation2 + $0x8] sm:$0xff] }
   0x9   :  { %142 = vmatmul.mubr.msk.bf16.vlgmr.msra.gmra.mxu0 %vm19_vm0, %v149_v3 }
  0xc9   :  { %v85_v5 = vpop.f32.mrf.mxu0 }
  0xca   :  { %v92_v6 = vadd.f32 %v85_v5, %v22_v4 }
  0xcb   :  { %v143_v7 = vpop.f32.mrf.mxu0 }
  0xcc   :  { %94 = vst.msk [vmem:[#allocation2] sm:$0xff] %vm19_vm0, %v92_v6 }
  0xcd   :  { %v88_v9 = vpop.f32.mrf.mxu0 }
  0xce   :  { %v93_v10 = vadd.f32 %v88_v9, %v23_v8 }
  0xcf   :  { %v144_v11 = vpop.f32.mrf.mxu0 }
  0xd0   :  { %95 = vst.msk [vmem:[#allocation2 + $0x8] sm:$0xff] %vm19_vm0, %v93_v10 }
  0xd3   :  { %v99_v13 = vld [vmem:[#allocation2] sm:$0xff] }
  0xd4   :  { %v108_v14 = vadd.f32 %v129_v12, %v99_v13 }
  0xd6   :  { %v132_v15 = vpack.c.bf16 %v108_v14, %v108_v14 }
  0xd7   :  { %v100_v16 = vld [vmem:[#allocation2 + $0x8] sm:$0xff] }
  0xd8   :  { %119 = vst.msk [vmem:[%s198_s3] sm:$0xf] %vm118_vm2, %v132_v15  ;;  %v109_v17 = vadd.f32 %v129_v12, %v100_v16 }
  0xda   :  { %v133_v18 = vpack.c.bf16 %v109_v17, %v109_v17 }
  0xdc   :  { %120 = vst.msk [vmem:[%s198_s3 + $0x4] sm:$0xf] %vm118_vm2, %v133_v18 }

// kernel: transformer_decoder_forward.21
= control target key start
LH: loop header
LB: loop body
LE: loop exit
PB: predicated region body
PF: predicated region fallthrough
CT: control target
= control target key end

     0   :  { %s939_s9 = smov 0   ;;  %s941_s10 = smov 0   ;;  %s1057_s0 = inlined_call_operand.vmem [shape: bf16[2,8,32], index: 0, kind: input, shape index: {}]   ;;  %s1058_s1 = inlined_call_operand.vmem [shape: bf16[2,8,64], index: 1, kind: input, shape index: {}]   ;;  %s1059_s2 = inlined_call_operand.vmem [shape: bf16[2,8,32], index: 2, kind: output, shape index: {}]  }
   0x1   :  { %s943_s11 = smov 0  }
   0x2 LB: > { %s24_s12 = sadd.s32 1, %s909_s10  ;;  %p759_p0 = scmp.ge.s32.totalorder %s913_s11, 1  ;;  %s913_s11 = sphi %s943_s11, %s12_s11   ;;  %s909_s10 = sphi %s941_s10, %s1061_s10   ;;  %s905_s9 = sphi %s939_s9, %s1060_s9  }
   0x3   : > { %p26_p1 = scmp.ge.s32.totalorder %s24_s12, 2  ;;  %p139_p2 = scmp.lt.s32.totalorder %s913_s11, 3 }
   0x5   : > { %s1063_s12 = smov (%p26_p1, %s24_s12), 0  ;;  %p140_p3 = pnand %p759_p0, %p139_p2 }
   0x6   : > { %p169_p4 = scmp.lt.s32.totalorder (!%p140_p3), %s905_s9, 1  ;;  %s917_s20 = smov (!%p140_p3), 120  }
   0x7   : > { %143 = sbr.rel (%p140_p3) target bundleno = 968 (0x3c8), region = 28  ;;  %s918_s21 = smov (!%p140_p3), 112  }
   0x8   : > { %s919_s22 = smov (!%p140_p3), 104   ;;  %s920_s23 = smov (!%p140_p3), 96  }
   0x9   : > { %s921_s24 = smov (!%p140_p3), 8   ;;  %s922_s25 = smov (!%p140_p3), 16  }
   0xa   : > { %s923_s26 = smov (!%p140_p3), 24  }
   0xc   : > { %v915_v0 = vmov 0.0   ;;  %vm916_vm0 = vmmov 0   ;;  %s1065_s9 = smov (!%p169_p4, %s905_s9), 1  ;;  %vm215_vm1 = vcmask 64512   ;;  %v207_v14 = vlaneseq }
   0xd   : > { %793 = vmatprep.subr.bf16.mxu0 %v915_v0  ;;  %795 = vmatprep.mubr.msk.bf16.mxu0 %vm916_vm0, %v915_v0  ;;  %s963_s13 = sshll.u32 %s1065_s9, 2  ;;  %vm455_vm3 = vcmask 1043456   ;;  %vm662_vm4 = vcmask 130048   ;;  %vm664_vm5 = vcmask 195584   ;;  %vm667_vm6 = vcmask 257024  }
   0xe   : > { %799 = vmatprep.subr.bf16.mxu1 %v915_v0  ;;  %801 = vmatprep.mubr.msk.bf16.mxu1 %vm916_vm0, %v915_v0  ;;  %s179_s16 = scalar_lea.vmem %s1058_s1, %s963_s13  ;;  %s175_s19 = scalar_lea.vmem %s1057_s0, %s963_s13  ;;  %v208_v15 = vshrl.u32 %v207_v14, 7  ;;  %v212_v16 = vand.u32 127, %v207_v14 }
   0xf   : > { %v973_v1 = vld [vmem:[%s179_s16] sm:$0xf]  ;;  %s186_s29 = scalar_lea.vmem %s1059_s2, %s963_s13 }
  0x10   : > { %v189_v2 = vld [vmem:[%s175_s19] sm:$0xf]  ;;  %200 = vrot.lane.b32.xlu0 %v973_v1, %s917_s20  ;;  %v220_v3 = vsel %vm215_vm1, %v973_v1, 0  ;;  %vm213_vm2 = vcmp.gt.s32.totalorder %v212_v16, %v208_v15  ;;  %v767_v42 = vcombine.low %v973_v1, %v973_v1 }
  0x11   : > { %v190_v4 = vmul.bf16 1052065461, %v189_v2  ;;  %794 = vmatpush3.bf16.xpose.msra.mxu0 %v220_v3  ;;  %v214_v17 = vsel %vm213_vm2, -1e+09, %v915_v0 }
  0x12   : > { %805 = vmatprep.subr.bf16.mxu0 %v915_v0 }
  0x13   : > { %192 = vrot.lane.b32.xlu1 %v190_v4, %s917_s20 }
  0x14   : > { %202 = vrot.lane.b32.xlu0 %v973_v1, %s918_s21 }
  0x17   : > { %204 = vrot.lane.b32.xlu1 %v973_v1, %s919_s22 }
  0x18   : > { %796 = vmatmul.mubr.msk.bf16.vlgmr.msra.gmra.mxu0 %vm215_vm1, %v190_v4  ;;  %194 = vrot.lane.b32.xlu0 %v190_v4, %s918_s21 }
  0x19   : > { %807 = vmatprep.mubr.msk.bf16.mxu0 %vm916_vm0, %v915_v0 }
  0x1b   : > { %196 = vrot.lane.b32.xlu1 %v190_v4, %s919_s22 }
  0x82   : > { %v984_v5 = vpop.permute.xlu0 %200 }
  0x83   : > { %v266_v6 = vsel %vm215_vm1, %v984_v5, 0  ;;  %v769_v4 = vcombine.low %v984_v5, %v984_v5 }
  0x84   : > { %800 = vmatpush3.bf16.xpose.msra.mxu1 %v266_v6 }
  0x85   : > { %v193_v7 = vpop.permute.xlu1 %192  ;;  %811 = vmatprep.subr.bf16.mxu1 %v915_v0 }
  0x86   : > { %v989_v8 = vpop.permute.xlu0 %202 }
  0x87   : > { %v312_v9 = vsel %vm215_vm1, %v989_v8, 0  ;;  %v771_v2 = vcombine.low %v989_v8, %v989_v8 }
  0x88   : > { %806 = vmatpush3.bf16.xpose.msra.mxu0 %v312_v9 }
  0x89   : > { %v993_v10 = vpop.permute.xlu1 %204  ;;  %817 = vmatprep.subr.bf16.mxu0 %v915_v0 }
  0x8a   : > { %v358_v11 = vsel %vm215_vm1, %v993_v10, 0  ;;  %v195_v12 = vpop.permute.xlu0 %194  ;;  %v773_v3 = vcombine.low %v993_v10, %v993_v10 }
  0x8b   : > { %802 = vmatmul.mubr.msk.bf16.vlgmr.msra.gmra.mxu1 %vm215_vm1, %v193_v7 }
  0x8c   : > { %812 = vmatpush3.bf16.xpose.msra.mxu1 %v358_v11  ;;  %813 = vmatprep.mubr.msk.bf16.mxu1 %vm916_vm0, %v915_v0 }
  0x8d   : > { %823 = vmatprep.subr.bf16.mxu1 %v915_v0  ;;  %v197_v13 = vpop.permute.xlu1 %196 }
  0x8f   : > { %808 = vmatmul.mubr.msk.bf16.vlgmr.msra.gmra.mxu0 %vm215_vm1, %v195_v12 }
  0x90   : > { %819 = vmatprep.mubr.msk.bf16.mxu0 %vm916_vm0, %v915_v0 }
  0x93   : > { %814 = vmatmul.mubr.msk.bf16.vlgmr.msra.gmra.mxu1 %vm215_vm1, %v197_v13 }
  0x94   : > { %825 = vmatprep.mubr.msk.bf16.mxu1 %vm916_vm0, %v915_v0 }
  0xd8   : > { %v256_v18 = vpop.f32.mrf.mxu0 }
  0xd9   : > { %v257_v19 = vadd.f32 %v256_v18, %v214_v17 }
  0xda   : > { %v797_v20 = vpop.f32.mrf.mxu0 }
  0xdb   : > { %v400_v21 = vsel %vm215_vm1, %v257_v19, -inf }
  0xdc   : > { %401 = vmax.xlane.f32.xlu0 %v400_v21  ;;  %v259_v22 = vpop.f32.mrf.mxu0 }
  0xde   : > { %v798_v23 = vpop.f32.mrf.mxu0 }
 0x14b   : > { %v302_v24 = vpop.f32.mrf.mxu1 }
 0x14c   : > { %v303_v25 = vadd.f32 %v302_v24, %v214_v17 }
 0x14d   : > { %v803_v26 = vpop.f32.mrf.mxu1 }
 0x14e   : > { %v403_v27 = vsel %vm215_vm1, %v303_v25, -inf }
 0x14f   : > { %404 = vmax.xlane.f32.xlu1 %v403_v27  ;;  %v305_v28 = vpop.f32.mrf.mxu1  ;;  %v348_v29 = vpop.f32.mrf.mxu0 }
 0x150   : > { %v349_v30 = vadd.f32 %v348_v29, %v214_v17 }
 0x151   : > { %v804_v31 = vpop.f32.mrf.mxu1  ;;  %v809_v32 = vpop.f32.mrf.mxu0 }
 0x152   : > { %v406_v33 = vsel %vm215_vm1, %v349_v30, -inf }
 0x153   : > { %v394_v34 = vpop.f32.mrf.mxu1  ;;  %407 = vmax.xlane.f32.xlu0 %v406_v33  ;;  %v351_v35 = vpop.f32.mrf.mxu0 }
 0x154   : > { %v395_v36 = vadd.f32 %v394_v34, %v214_v17 }
 0x155   : > { %v810_v37 = vpop.f32.mrf.mxu0  ;;  %v815_v38 = vpop.f32.mrf.mxu1 }
 0x156   : > { %v409_v39 = vsel %vm215_vm1, %v395_v36, -inf }
 0x157   : > { %v397_v40 = vpop.f32.mrf.mxu1  ;;  %410 = vmax.xlane.f32.xlu0 %v409_v39 }
 0x159   : > { %v816_v41 = vpop.f32.mrf.mxu1 }
 0x160   : > { %450 = vrot.lane.b32.xlu1 %v767_v42, %s920_s23 }
 0x165   : > { %v402_v43 = vpop.xlane.xlu0 %401 }
 0x166   : > { %v412_v44 = vsub.f32 %v257_v19, %v402_v43 }
 0x168   : > { %v416_v45 = vmul.f32 1.442695, %v412_v44 }
 0x16a   : > { %875 = vpow2.f32 %v416_v45 }
 0x177   : > { %v876_v46 = vpop.eup %875 }
 0x178   : > { %v424_v47 = vsel %vm215_vm1, %v876_v46, 0.0 }
 0x184   : > { %425 = vadd.xlane.f32.xlu1 %v424_v47 }
 0x1d8   : > { %v405_v48 = vpop.xlane.xlu1 %404 }
 0x1d9   : > { %v413_v49 = vsub.f32 %v303_v25, %v405_v48 }
 0x1db   : > { %v418_v50 = vmul.f32 1.442695, %v413_v49 }
 0x1dc   : > { %v408_v51 = vpop.xlane.xlu0 %407  ;;  %v451_v52 = vpop.permute.xlu1 %450 }
 0x1dd   : > { %877 = vpow2.f32 %v418_v50  ;;  %v414_v53 = vsub.f32 %v349_v30, %v408_v51  ;;  %v457_v54 = vsel %vm455_vm3, %v451_v52, 0 }
 0x1de   : > { %818 = vmatpush3.bf16.msra.mxu0 %v457_v54 }
 0x1df   : > { %v420_v55 = vmul.f32 1.442695, %v414_v53  ;;  %829 = vmatprep.subr.bf16.mxu0 %v915_v0 }
 0x1e0   : > { %v411_v56 = vpop.xlane.xlu0 %410 }
 0x1e1   : > { %879 = vpow2.f32 %v420_v55  ;;  %v415_v57 = vsub.f32 %v395_v36, %v411_v56 }
 0x1e3   : > { %v422_v58 = vmul.f32 1.442695, %v415_v57 }
 0x1e5   : > { %881 = vpow2.f32 %v422_v58 }
 0x1ea   : > { %v878_v59 = vpop.eup %877 }
 0x1eb   : > { %v427_v60 = vsel %vm215_vm1, %v878_v59, 0.0 }
 0x1ec   : > { %428 = vadd.xlane.f32.xlu0 %v427_v60 }
 0x1ee   : > { %v880_v61 = vpop.eup %879 }
 0x1ef   : > { %v430_v62 = vsel %vm215_vm1, %v880_v61, 0.0 }
 0x1f0   : > { %431 = vadd.xlane.f32.xlu1 %v430_v62 }
 0x1f2   : > { %v882_v63 = vpop.eup %881 }
 0x1f3   : > { %v433_v1 = vsel %vm215_vm1, %v882_v63, 0.0 }
 0x1f4   : > { %434 = vadd.xlane.f32.xlu0 %v433_v1 }
 0x201   : > { %551 = vrot.lane.b32.xlu1 %v771_v2, %s920_s23 }
 0x205   : > { %601 = vrot.lane.b32.xlu1 %v773_v3, %s920_s23 }
 0x20a   : > { %501 = vrot.lane.b32.xlu0 %v769_v4, %s920_s23 }
 0x20d   : > { %v426_v6 = vpop.xlane.xlu1 %425 }
 0x20e   : > { %883 = vrcp.f32 %v426_v6 }
 0x21b   : > { %v884_v7 = vpop.eup %883 }
 0x21c   : > { %v440_v9 = vmul.f32 %v884_v7, %v876_v46 }
 0x21e   : > { %v444_v11 = vpack.c.bf16 %v440_v9, %v440_v9 }
 0x220   : > { %820 = vmatmul.mubr.msk.bf16.vlgmr.msra.gmra.mxu0 %vm215_vm1, %v444_v11 }
 0x221   : > { %831 = vmatprep.mubr.msk.bf16.mxu0 %vm916_vm0, %v915_v0 }
 0x275   : > { %v429_v8 = vpop.xlane.xlu0 %428 }
 0x276   : > { %885 = vrcp.f32 %v429_v8 }
 0x279   : > { %v432_v10 = vpop.xlane.xlu1 %431 }
 0x27a   : > { %887 = vrcp.f32 %v432_v10 }
 0x27d   : > { %v552_v12 = vpop.permute.xlu1 %551  ;;  %v435_v13 = vpop.xlane.xlu0 %434 }
 0x27e   : > { %v557_v5 = vsel %vm455_vm3, %v552_v12, 0  ;;  %889 = vrcp.f32 %v435_v13 }
 0x27f   : > { %830 = vmatpush3.bf16.msra.mxu0 %v557_v5 }
 0x281   : > { %v502_v14 = vpop.permute.xlu0 %501  ;;  %v602_v18 = vpop.permute.xlu1 %601 }
 0x282   : > { %v507_v15 = vsel %vm455_vm3, %v502_v14, 0  ;;  %v607_v21 = vsel %vm455_vm3, %v602_v18, 0 }
 0x283   : > { %v886_v16 = vpop.eup %885  ;;  %824 = vmatpush3.bf16.msra.mxu1 %v507_v15 }
 0x284   : > { %835 = vmatprep.subr.bf16.mxu1 %v915_v0  ;;  %v441_v17 = vmul.f32 %v886_v16, %v878_v59 }
 0x286   : > { %v445_v19 = vpack.c.bf16 %v441_v17, %v441_v17 }
 0x287   : > { %v888_v20 = vpop.eup %887 }
 0x288   : > { %826 = vmatmul.mubr.msk.bf16.vlgmr.msra.gmra.mxu1 %vm215_vm1, %v445_v19  ;;  %v442_v22 = vmul.f32 %v888_v20, %v880_v61 }
 0x289   : > { %836 = vmatpush3.bf16.msra.mxu1 %v607_v21  ;;  %837 = vmatprep.mubr.msk.bf16.mxu1 %vm916_vm0, %v915_v0 }
 0x28a   : > { %v446_v23 = vpack.c.bf16 %v442_v22, %v442_v22 }
 0x28b   : > { %v890_v24 = vpop.eup %889 }
 0x28c   : > { %832 = vmatmul.mubr.msk.bf16.vlgmr.msra.gmra.mxu0 %vm215_vm1, %v446_v23  ;;  %v443_v25 = vmul.f32 %v890_v24, %v882_v63 }
 0x28e   : > { %v447_v26 = vpack.c.bf16 %v443_v25, %v443_v25 }
 0x290   : > { %838 = vmatmul.mubr.msk.bf16.vlgmr.msra.gmra.mxu1 %vm215_vm1, %v447_v26 }
 0x2e0   : > { %v493_v27 = vpop.f32.mrf.mxu0 }
 0x2e2   : > { %v821_v28 = vpop.f32.mrf.mxu0 }
 0x2e4   : > { %v496_v29 = vpop.f32.mrf.mxu0 }
 0x2e6   : > { %v822_v30 = vpop.f32.mrf.mxu0 }
 0x348   : > { %v543_v31 = vpop.f32.mrf.mxu1 }
 0x349   : > { %650 = vrot.lane.b32.xlu0 %v543_v31, %s921_s24 }
 0x34a   : > { %v827_v32 = vpop.f32.mrf.mxu1 }
 0x34c   : > { %v546_v33 = vpop.f32.mrf.mxu1  ;;  %v593_v34 = vpop.f32.mrf.mxu0 }
 0x34d   : > { %654 = vrot.lane.b32.xlu1 %v593_v34, %s922_s25 }
 0x34e   : > { %v828_v0 = vpop.f32.mrf.mxu1  ;;  %v833_v35 = vpop.f32.mrf.mxu0 }
 0x350   : > { %v596_v36 = vpop.f32.mrf.mxu0  ;;  %v643_v37 = vpop.f32.mrf.mxu1 }
 0x351   : > { %658 = vrot.lane.b32.xlu0 %v643_v37, %s923_s26 }
 0x352   : > { %v834_v38 = vpop.f32.mrf.mxu0  ;;  %v839_v39 = vpop.f32.mrf.mxu1 }
 0x354   : > { %v646_v40 = vpop.f32.mrf.mxu1 }
 0x356   : > { %v840_v41 = vpop.f32.mrf.mxu1 }
 0x3bb   : > { %v651_v42 = vpop.permute.xlu0 %650 }
 0x3bc   : > { %v661_v44 = vsel %vm215_vm1, %v493_v27, %v651_v42 }
 0x3bf   : > { %v655_v43 = vpop.permute.xlu1 %654 }
 0x3c0   : > { %v663_v45 = vsel %vm662_vm4, %v661_v44, %v655_v43 }
 0x3c3   : > { %v659_v46 = vpop.permute.xlu0 %658 }
 0x3c4   : > { %v665_v47 = vsel %vm664_vm5, %v663_v45, %v659_v46 }
 0x3c5   : > { %v666_v48 = vpack.c.bf16 %v665_v47, %v665_v47 }
 0x3c7   : > { %668 = vst.msk [vmem:[%s186_s29] sm:$0xf] %vm667_vm6, %v666_v48 }
 0x3c8 PF: > { %s12_s11 = sadd.s32 1, %s913_s11   ;;  %s1060_s9 = smov %s909_s10 }
 0x3c9   : > { %p9_p5 = scmp.ge.s32.totalorder %s12_s11, 4   ;;  %s1061_s10 = smov %s1063_s12 }
 0x3cb   :  { %11 = sbr.rel (!%p9_p5) target bundleno = 2 (0x2), region = 61 }

// kernel: transformer_decoder_forward.37
= control target key start
LH: loop header
LB: loop body
LE: loop exit
PB: predicated region body
PF: predicated region fallthrough
CT: control target
= control target key end

     0   :  { %v176_v1 = vmov 0.0   ;;  %vm177_vm0 = vmmov 0   ;;  %vm20_vm1 = vcmask 408576   ;;  %s222_s0 = inlined_call_operand.vmem [shape: bf16[16,32], index: 0, kind: input, shape index: {}]   ;;  %s223_s1 = inlined_call_operand.vmem [shape: bf16[32,50], index: 1, kind: input, shape index: {}]   ;;  %s224_s2 = inlined_call_operand.vmem [shape: f32[1,50], index: 2, kind: input, shape index: {}]   ;;  %s225_s3 = inlined_call_operand.hbm [shape: f32[16,50], index: 3, kind: output, shape index: {}]  }
   0x1   :  { %v151_v0 = vld [vmem:[%s223_s1 + $0x8] sm:$0xff]   ;;  %138 = vmatprep.subr.bf16.mxu0 %v176_v1  ;;  %v152_v2 = vld [vmem:[%s223_s1] sm:$0xff]   ;;  %142 = vmatprep.mubr.msk.bf16.mxu0 %vm177_vm0, %v176_v1 }
   0x2   :  { %139 = vmatpush3.bf16.msra.mxu0 %v151_v0 }
   0x3   :  { %140 = vmatprep.subr.bf16.mxu0 %v176_v1 }
   0x4   :  { %8 = vsyncpa [#allocation4], 0  ;;  %21 = vst.msk [vmem:[#allocation2] sm:$0xff] %vm20_vm1, %v176_v1  ;;  %v153_v3 = vld [vmem:[%s222_s0] sm:$0xff]   ;;  %vm48_vm2 = vcmask 261120   ;;  %s178_s0 = smov [#allocation3]  }
   0x5   :  { %22 = vst.msk [vmem:[#allocation2 + $0x8] sm:$0xff] %vm20_vm1, %v176_v1  ;;  %v134_v12 = vld [vmem:[%s224_s2] ss:$0 sm:$0xff]  ;;  %s119_s19 = sshll.u32 %s178_s0, 4  ;;  %s120_s19 = int_to_ptr.vmem [resolvable:$true] %s119_s19 }
   0x6   :  { %141 = vmatpush3.bf16.msra.mxu0 %v152_v2  ;;  %s154_s20 = scalar_lea.vmem %s120_s19, 256  ;;  %p159_p1 = scmp.lt.s32.totalorder %s120_s19, %s120_s19 }
   0x7   :  { %p155_p0 = scmp.ne.s32.totalorder %s120_s19, %s154_s20  ;;  %p160_p2 = scmp.lt.s32.totalorder %s154_s20, %s154_s20 }
   0x9   :  { %143 = vmatmul.mubr.msk.bf16.vlgmr.msra.gmra.mxu0 %vm48_vm2, %v153_v3  ;;  %p161_p3 = por %p160_p2, %p159_p1 }
   0xb   :  { %v23_v4 = vld [vmem:[#allocation2] sm:$0xff]  ;;  %p162_p4 = pnand %p161_p3, %p155_p0 }
   0xc   :  { %v24_v8 = vld [vmem:[#allocation2 + $0x8] sm:$0xff] }
  0xc9   :  { %v86_v5 = vpop.f32.mrf.mxu0 }
  0xca   :  { %v93_v6 = vadd.f32 %v86_v5, %v23_v4 }
  0xcb   :  { %v144_v7 = vpop.f32.mrf.mxu0 }
  0xcc   :  { %96 = vst.msk [vmem:[#allocation2] sm:$0xff] %vm20_vm1, %v93_v6 }
  0xcd   :  { %v89_v9 = vpop.f32.mrf.mxu0 }
  0xce   :  { %v94_v10 = vadd.f32 %v89_v9, %v24_v8 }
  0xcf   :  { %v145_v11 = vpop.f32.mrf.mxu0 }
  0xd0   :  { %97 = vst.msk [vmem:[#allocation2 + $0x8] sm:$0xff] %vm20_vm1, %v94_v10 }
  0xd3   :  { %v101_v13 = vld [vmem:[#allocation2] sm:$0xff] }
  0xd4   :  { %v110_v14 = vadd.f32 %v134_v12, %v101_v13 }
  0xd6   :  { %112 = vst.msk [vmem:[#allocation3] sm:$0xff] %vm20_vm1, %v110_v14 }
  0xd7   :  { %v102_v15 = vld [vmem:[#allocation2 + $0x8] sm:$0xff] }
  0xd8   :  { %v111_v16 = vadd.f32 %v134_v12, %v102_v15 }
  0xda   :  { %113 = vst.msk [vmem:[#allocation3 + $0x8] sm:$0xff] %vm20_vm1, %v111_v16 }
  0xdb   :  { %165 = shalt.err (!%p162_p4)
}
  0xdc   :  { %s179_s21 = smov 128   ;;  %s180_s2 = smov 8  }
  0xdd   :  { %125 = dma.vmem_to_hbm [thread:$0]  %s120_s19, 256, %s225_s3, [#allocation4], %s179_s21, %s179_s21, %s180_s2  }
  0xde   :  { %174 = dma.done.wait [#allocation4], 256  }
  0xdf   :  { %175 = vsyncadd [#allocation4], 4294967040 }
  0xe0   :  { %129 = vsyncpa [#allocation4], 1 }

// kernel: transformer_decoder_forward.27
= control target key start
LH: loop header
LB: loop body
LE: loop exit
PB: predicated region body
PF: predicated region fallthrough
CT: control target
= control target key end

     0   :  { %v312_v0 = vmov 0.0   ;;  %vm313_vm0 = vmmov 0   ;;  %vm57_vm1 = vcmask 261120   ;;  %vm144_vm2 = vcmask 523264   ;;  %s398_s1 = inlined_call_operand.vmem [shape: bf16[32,64], index: 1, kind: input, shape index: {}]   ;;  %s399_s0 = inlined_call_operand.vmem [shape: bf16[16,32], index: 0, kind: input, shape index: {}]   ;;  %s400_s3 = inlined_call_operand.vmem [shape: bf16[64,32], index: 3, kind: input, shape index: {}]   ;;  %s401_s2 = inlined_call_operand.vmem [shape: f32[1,64], index: 2, kind: input, shape index: {}]   ;;  %s402_s4 = inlined_call_operand.vmem [shape: f32[1,32], index: 4, kind: input, shape index: {}]   ;;  %s403_s5 = inlined_call_operand.vmem [shape: f32[1,32], index: 5, kind: input, shape index: {}]   ;;  %s404_s6 = inlined_call_operand.vmem [shape: f32[1,32], index: 6, kind: input, shape index: {}]   ;;  %s405_s7 = inlined_call_operand.vmem [shape: bf16[16,32], index: 7, kind: output, shape index: {}]  }
   0x1   :  { %278 = vmatprep.subr.bf16.mxu0 %v312_v0  ;;  %v300_v1 = vld [vmem:[%s398_s1 + $0x8] sm:$0xff]   ;;  %282 = vmatprep.mubr.msk.bf16.mxu0 %vm313_vm0, %v312_v0  ;;  %v301_v2 = vld [vmem:[%s398_s1] sm:$0xff]   ;;  %v303_v4 = vld [vmem:[%s400_s3 + $0x18] sm:$0xff]   ;;  %vm246_vm3 = vcmask 257024  }
   0x2   :  { %286 = vmatprep.subr.bf16.mxu1 %v312_v0  ;;  %294 = vmatprep.mubr.msk.bf16.mxu1 %vm313_vm0, %v312_v0  ;;  %v27_v3 = vld [vmem:[%s399_s0] sm:$0xff]   ;;  %v304_v5 = vld [vmem:[%s400_s3 + $0x10] sm:$0xff]   ;;  %v305_v6 = vld [vmem:[%s400_s3 + $0x8] sm:$0xff]  }
   0x3   :  { %279 = vmatpush3.bf16.msra.mxu0 %v300_v1  ;;  %287 = vmatpush3.bf16.msra.mxu1 %v303_v4  ;;  %v306_v7 = vld [vmem:[%s400_s3] sm:$0xff]   ;;  %v189_v19 = vunpack.c.l.bf16 %v27_v3  ;;  %v190_v24 = vunpack.c.h.bf16 %v27_v3 }
   0x4   :  { %280 = vmatprep.subr.bf16.mxu0 %v312_v0  ;;  %288 = vmatprep.subr.bf16.mxu1 %v312_v0  ;;  %v253_v8 = vld [vmem:[%s401_s2] ss:$0 sm:$0xff] }
   0x5   :  { %v258_v18 = vld [vmem:[%s402_s4] ss:$0 sm:$0xff] }
   0x6   :  { %v264_v48 = vld [vmem:[%s403_s5] ss:$0 sm:$0xff] }
   0x7   :  { %281 = vmatpush3.bf16.msra.mxu0 %v301_v2  ;;  %289 = vmatpush3.bf16.msra.mxu1 %v304_v5  ;;  %v265_v50 = vld [vmem:[%s404_s6] ss:$0 sm:$0xff] }
   0x8   :  { %290 = vmatprep.subr.bf16.mxu1 %v312_v0 }
   0xa   :  { %283 = vmatmul.mubr.msk.bf16.vlgmr.msra.gmra.mxu0 %vm57_vm1, %v27_v3 }
   0xb   :  { %291 = vmatpush3.bf16.msra.mxu1 %v305_v6 }
   0xc   :  { %292 = vmatprep.subr.bf16.mxu1 %v312_v0 }
   0xf   :  { %293 = vmatpush3.bf16.msra.mxu1 %v306_v7 }
  0xca   :  { %v95_v9 = vpop.f32.mrf.mxu0 }
  0xcb   :  { %v96_v11 = vadd.f32 %v253_v8, %v95_v9 }
  0xcc   :  { %v284_v10 = vpop.f32.mrf.mxu0 }
  0xcd   :  { %v102_v15 = vmax.f32 %v96_v11, 0.0 }
  0xce   :  { %v98_v12 = vpop.f32.mrf.mxu0 }
  0xcf   :  { %v99_v13 = vadd.f32 %v253_v8, %v98_v12 }
  0xd0   :  { %v285_v14 = vpop.f32.mrf.mxu0 }
  0xd1   :  { %v103_v16 = vmax.f32 %v99_v13, 0.0 }
  0xd3   :  { %v104_v17 = vpack.c.bf16 %v103_v16, %v102_v15 }
  0xd5   :  { %295 = vmatmul.mubr.msk.bf16.vlgmr.msra.gmra.mxu1 %vm144_vm2, %v104_v17 }
 0x195   :  { %v182_v20 = vpop.f32.mrf.mxu1 }
 0x196   :  { %v183_v21 = vadd.f32 %v258_v18, %v182_v20 }
 0x197   :  { %v296_v22 = vpop.f32.mrf.mxu1 }
 0x198   :  { %v191_v23 = vadd.f32 %v189_v19, %v183_v21 }
 0x199   :  { %v185_v25 = vpop.f32.mrf.mxu1 }
 0x19a   :  { %v186_v26 = vadd.f32 %v258_v18, %v185_v25  ;;  %v193_v27 = vsel %vm57_vm1, %v191_v23, 0.0 }
 0x19b   :  { %194 = vadd.xlane.f32.xlu0 %v193_v27  ;;  %v297_v28 = vpop.f32.mrf.mxu1 }
 0x19c   :  { %v192_v29 = vadd.f32 %v190_v24, %v186_v26 }
 0x19e   :  { %v196_v30 = vsel %vm57_vm1, %v192_v29, 0.0 }
 0x19f   :  { %197 = vadd.xlane.f32.xlu0 %v196_v30 }
 0x224   :  { %v195_v31 = vpop.xlane.xlu0 %194 }
 0x225   :  { %v200_v32 = vmul.f32 0.03125, %v195_v31 }
 0x227   :  { %v202_v33 = vsub.f32 %v191_v23, %v200_v32 }
 0x228   :  { %v198_v34 = vpop.xlane.xlu0 %197 }
 0x229   :  { %v201_v35 = vmul.f32 0.03125, %v198_v34  ;;  %v204_v36 = vmul.f32 %v202_v33, %v202_v33 }
 0x22b   :  { %v203_v37 = vsub.f32 %v192_v29, %v201_v35  ;;  %v206_v38 = vsel %vm57_vm1, %v204_v36, 0.0 }
 0x22c   :  { %207 = vadd.xlane.f32.xlu1 %v206_v38 }
 0x22d   :  { %v205_v39 = vmul.f32 %v203_v37, %v203_v37 }
 0x22f   :  { %v209_v40 = vsel %vm57_vm1, %v205_v39, 0.0 }
 0x230   :  { %210 = vadd.xlane.f32.xlu1 %v209_v40 }
 0x2b5   :  { %v208_v41 = vpop.xlane.xlu1 %207 }
 0x2b6   :  { %v212_v42 = vmul.f32 0.03125, %v208_v41 }
 0x2b8   :  { %v214_v43 = vadd.f32 1e-05, %v212_v42 }
 0x2b9   :  { %v211_v44 = vpop.xlane.xlu1 %210 }
 0x2ba   :  { %308 = vrsqrt.f32 %v214_v43  ;;  %v213_v45 = vmul.f32 0.03125, %v211_v44 }
 0x2bc   :  { %v215_v46 = vadd.f32 1e-05, %v213_v45 }
 0x2be   :  { %310 = vrsqrt.f32 %v215_v46 }
 0x2c7   :  { %v309_v47 = vpop.eup %308 }
 0x2c8   :  { %v218_v49 = vmul.f32 %v309_v47, %v202_v33 }
 0x2ca   :  { %v227_v51 = vmul.f32 %v264_v48, %v218_v49 }
 0x2cb   :  { %v311_v52 = vpop.eup %310 }
 0x2cc   :  { %v236_v53 = vadd.f32 %v265_v50, %v227_v51  ;;  %v219_v54 = vmul.f32 %v311_v52, %v203_v37 }
 0x2ce   :  { %v268_v55 = vpack.c.bf16 %v236_v53, %v236_v53  ;;  %v228_v56 = vmul.f32 %v264_v48, %v219_v54 }
 0x2d0   :  { %247 = vst.msk [vmem:[%s405_s7] sm:$0xf] %vm246_vm3, %v268_v55  ;;  %v237_v57 = vadd.f32 %v265_v50, %v228_v56 }
 0x2d2   :  { %v269_v58 = vpack.c.bf16 %v237_v57, %v237_v57 }
 0x2d4   :  { %248 = vst.msk [vmem:[%s405_s7 + $0x4] sm:$0xf] %vm246_vm3, %v269_v58 }

// kernel: transformer_decoder_forward.25
= control target key start
LH: loop header
LB: loop body
LE: loop exit
PB: predicated region body
PF: predicated region fallthrough
CT: control target
= control target key end

     0   :  { %s930_s9 = smov 0   ;;  %s932_s10 = smov 0   ;;  %s1047_s0 = inlined_call_operand.vmem [shape: bf16[2,8,32], index: 0, kind: input, shape index: {}]   ;;  %s1048_s1 = inlined_call_operand.vmem [shape: bf16[2,8,64], index: 1, kind: input, shape index: {}]   ;;  %s1049_s2 = inlined_call_operand.vmem [shape: bf16[2,8,32], index: 2, kind: output, shape index: {}]  }
   0x1   :  { %s934_s11 = smov 0  }
   0x2 LB: > { %s24_s12 = sadd.s32 1, %s900_s10  ;;  %p750_p0 = scmp.ge.s32.totalorder %s904_s11, 1  ;;  %s904_s11 = sphi %s934_s11, %s12_s11   ;;  %s900_s10 = sphi %s932_s10, %s1051_s10   ;;  %s896_s9 = sphi %s930_s9, %s1050_s9  }
   0x3   : > { %p26_p1 = scmp.ge.s32.totalorder %s24_s12, 2  ;;  %p139_p2 = scmp.lt.s32.totalorder %s904_s11, 3 }
   0x5   : > { %s1053_s12 = smov (%p26_p1, %s24_s12), 0  ;;  %p140_p3 = pnand %p750_p0, %p139_p2 }
   0x6   : > { %p169_p4 = scmp.lt.s32.totalorder (!%p140_p3), %s896_s9, 1  ;;  %s908_s20 = smov (!%p140_p3), 120  }
   0x7   : > { %143 = sbr.rel (%p140_p3) target bundleno = 966 (0x3c6), region = 28  ;;  %s909_s21 = smov (!%p140_p3), 112  }
   0x8   : > { %s910_s22 = smov (!%p140_p3), 104   ;;  %s911_s23 = smov (!%p140_p3), 96  }
   0x9   : > { %s912_s24 = smov (!%p140_p3), 8   ;;  %s913_s25 = smov (!%p140_p3), 16  }
   0xa   : > { %s914_s26 = smov (!%p140_p3), 24  }
   0xc   : > { %v906_v0 = vmov 0.0   ;;  %vm907_vm0 = vmmov 0   ;;  %s1055_s9 = smov (!%p169_p4, %s896_s9), 1  ;;  %vm206_vm1 = vcmask 64512   ;;  %vm446_vm2 = vcmask 1043456  }
   0xd   : > { %784 = vmatprep.subr.bf16.mxu0 %v906_v0  ;;  %786 = vmatprep.mubr.msk.bf16.mxu0 %vm907_vm0, %v906_v0  ;;  %s954_s13 = sshll.u32 %s1055_s9, 2  ;;  %vm653_vm3 = vcmask 130048   ;;  %vm655_vm4 = vcmask 195584   ;;  %vm658_vm5 = vcmask 257024  }
   0xe   : > { %790 = vmatprep.subr.bf16.mxu1 %v906_v0  ;;  %792 = vmatprep.mubr.msk.bf16.mxu1 %vm907_vm0, %v906_v0  ;;  %s179_s16 = scalar_lea.vmem %s1048_s1, %s954_s13  ;;  %s175_s19 = scalar_lea.vmem %s1047_s0, %s954_s13 }
   0xf   : > { %v964_v1 = vld [vmem:[%s179_s16] sm:$0xf]  ;;  %s186_s29 = scalar_lea.vmem %s1049_s2, %s954_s13 }
  0x10   : > { %v189_v2 = vld [vmem:[%s175_s19] sm:$0xf]  ;;  %200 = vrot.lane.b32.xlu0 %v964_v1, %s908_s20  ;;  %v211_v3 = vsel %vm206_vm1, %v964_v1, 0  ;;  %v758_v34 = vcombine.low %v964_v1, %v964_v1 }
  0x11   : > { %v190_v4 = vmul.bf16 1052065461, %v189_v2  ;;  %785 = vmatpush3.bf16.xpose.msra.mxu0 %v211_v3 }
  0x12   : > { %796 = vmatprep.subr.bf16.mxu0 %v906_v0 }
  0x13   : > { %192 = vrot.lane.b32.xlu1 %v190_v4, %s908_s20 }
  0x14   : > { %202 = vrot.lane.b32.xlu0 %v964_v1, %s909_s21 }
  0x17   : > { %204 = vrot.lane.b32.xlu1 %v964_v1, %s910_s22 }
  0x18   : > { %787 = vmatmul.mubr.msk.bf16.vlgmr.msra.gmra.mxu0 %vm206_vm1, %v190_v4  ;;  %194 = vrot.lane.b32.xlu0 %v190_v4, %s909_s21 }
  0x19   : > { %798 = vmatprep.mubr.msk.bf16.mxu0 %vm907_vm0, %v906_v0 }
  0x1b   : > { %196 = vrot.lane.b32.xlu1 %v190_v4, %s910_s22 }
  0x82   : > { %v975_v5 = vpop.permute.xlu0 %200 }
  0x83   : > { %v257_v6 = vsel %vm206_vm1, %v975_v5, 0  ;;  %v760_v59 = vcombine.low %v975_v5, %v975_v5 }
  0x84   : > { %791 = vmatpush3.bf16.xpose.msra.mxu1 %v257_v6 }
  0x85   : > { %v193_v7 = vpop.permute.xlu1 %192  ;;  %802 = vmatprep.subr.bf16.mxu1 %v906_v0 }
  0x86   : > { %v980_v8 = vpop.permute.xlu0 %202 }
  0x87   : > { %v303_v9 = vsel %vm206_vm1, %v980_v8, 0  ;;  %v762_v57 = vcombine.low %v980_v8, %v980_v8 }
  0x88   : > { %797 = vmatpush3.bf16.xpose.msra.mxu0 %v303_v9 }
  0x89   : > { %v984_v10 = vpop.permute.xlu1 %204  ;;  %808 = vmatprep.subr.bf16.mxu0 %v906_v0 }
  0x8a   : > { %v349_v11 = vsel %vm206_vm1, %v984_v10, 0  ;;  %v195_v12 = vpop.permute.xlu0 %194  ;;  %v764_v58 = vcombine.low %v984_v10, %v984_v10 }
  0x8b   : > { %793 = vmatmul.mubr.msk.bf16.vlgmr.msra.gmra.mxu1 %vm206_vm1, %v193_v7 }
  0x8c   : > { %803 = vmatpush3.bf16.xpose.msra.mxu1 %v349_v11  ;;  %804 = vmatprep.mubr.msk.bf16.mxu1 %vm907_vm0, %v906_v0 }
  0x8d   : > { %814 = vmatprep.subr.bf16.mxu1 %v906_v0  ;;  %v197_v13 = vpop.permute.xlu1 %196 }
  0x8f   : > { %799 = vmatmul.mubr.msk.bf16.vlgmr.msra.gmra.mxu0 %vm206_vm1, %v195_v12 }
  0x90   : > { %810 = vmatprep.mubr.msk.bf16.mxu0 %vm907_vm0, %v906_v0 }
  0x93   : > { %805 = vmatmul.mubr.msk.bf16.vlgmr.msra.gmra.mxu1 %vm206_vm1, %v197_v13 }
  0x94   : > { %816 = vmatprep.mubr.msk.bf16.mxu1 %vm907_vm0, %v906_v0 }
  0xd8   : > { %v247_v14 = vpop.f32.mrf.mxu0 }
  0xd9   : > { %v391_v15 = vsel %vm206_vm1, %v247_v14, -inf }
  0xda   : > { %392 = vmax.xlane.f32.xlu0 %v391_v15  ;;  %v788_v16 = vpop.f32.mrf.mxu0 }
  0xdc   : > { %v250_v17 = vpop.f32.mrf.mxu0 }
  0xde   : > { %v789_v18 = vpop.f32.mrf.mxu0 }
 0x14b   : > { %v293_v19 = vpop.f32.mrf.mxu1 }
 0x14c   : > { %v394_v20 = vsel %vm206_vm1, %v293_v19, -inf }
 0x14d   : > { %395 = vmax.xlane.f32.xlu1 %v394_v20  ;;  %v794_v21 = vpop.f32.mrf.mxu1 }
 0x14f   : > { %v296_v22 = vpop.f32.mrf.mxu1  ;;  %v339_v23 = vpop.f32.mrf.mxu0 }
 0x150   : > { %v397_v24 = vsel %vm206_vm1, %v339_v23, -inf }
 0x151   : > { %v795_v25 = vpop.f32.mrf.mxu1  ;;  %398 = vmax.xlane.f32.xlu0 %v397_v24  ;;  %v800_v26 = vpop.f32.mrf.mxu0 }
 0x153   : > { %v342_v27 = vpop.f32.mrf.mxu0  ;;  %v385_v28 = vpop.f32.mrf.mxu1 }
 0x154   : > { %v400_v29 = vsel %vm206_vm1, %v385_v28, -inf }
 0x155   : > { %v806_v30 = vpop.f32.mrf.mxu1  ;;  %401 = vmax.xlane.f32.xlu0 %v400_v29  ;;  %v801_v31 = vpop.f32.mrf.mxu0 }
 0x157   : > { %v388_v32 = vpop.f32.mrf.mxu1 }
 0x159   : > { %v807_v33 = vpop.f32.mrf.mxu1 }
 0x15e   : > { %441 = vrot.lane.b32.xlu1 %v758_v34, %s911_s23 }
 0x163   : > { %v393_v35 = vpop.xlane.xlu0 %392 }
 0x164   : > { %v403_v36 = vsub.f32 %v247_v14, %v393_v35 }
 0x166   : > { %v407_v37 = vmul.f32 1.442695, %v403_v36 }
 0x168   : > { %866 = vpow2.f32 %v407_v37 }
 0x175   : > { %v867_v38 = vpop.eup %866 }
 0x176   : > { %v415_v39 = vsel %vm206_vm1, %v867_v38, 0.0 }
 0x182   : > { %416 = vadd.xlane.f32.xlu1 %v415_v39 }
 0x1d6   : > { %v396_v40 = vpop.xlane.xlu1 %395 }
 0x1d7   : > { %v404_v41 = vsub.f32 %v293_v19, %v396_v40 }
 0x1d9   : > { %v409_v42 = vmul.f32 1.442695, %v404_v41 }
 0x1da   : > { %v399_v43 = vpop.xlane.xlu0 %398  ;;  %v442_v44 = vpop.permute.xlu1 %441 }
 0x1db   : > { %868 = vpow2.f32 %v409_v42  ;;  %v405_v45 = vsub.f32 %v339_v23, %v399_v43  ;;  %v448_v46 = vsel %vm446_vm2, %v442_v44, 0 }
 0x1dc   : > { %809 = vmatpush3.bf16.msra.mxu0 %v448_v46 }
 0x1dd   : > { %v411_v47 = vmul.f32 1.442695, %v405_v45  ;;  %820 = vmatprep.subr.bf16.mxu0 %v906_v0 }
 0x1de   : > { %v402_v48 = vpop.xlane.xlu0 %401 }
 0x1df   : > { %870 = vpow2.f32 %v411_v47  ;;  %v406_v49 = vsub.f32 %v385_v28, %v402_v48 }
 0x1e1   : > { %v413_v50 = vmul.f32 1.442695, %v406_v49 }
 0x1e3   : > { %872 = vpow2.f32 %v413_v50 }
 0x1e8   : > { %v869_v51 = vpop.eup %868 }
 0x1e9   : > { %v418_v52 = vsel %vm206_vm1, %v869_v51, 0.0 }
 0x1ea   : > { %419 = vadd.xlane.f32.xlu0 %v418_v52 }
 0x1ec   : > { %v871_v53 = vpop.eup %870 }
 0x1ed   : > { %v421_v54 = vsel %vm206_vm1, %v871_v53, 0.0 }
 0x1ee   : > { %422 = vadd.xlane.f32.xlu1 %v421_v54 }
 0x1f0   : > { %v873_v55 = vpop.eup %872 }
 0x1f1   : > { %v424_v56 = vsel %vm206_vm1, %v873_v55, 0.0 }
 0x1f2   : > { %425 = vadd.xlane.f32.xlu0 %v424_v56 }
 0x1ff   : > { %542 = vrot.lane.b32.xlu1 %v762_v57, %s911_s23 }
 0x203   : > { %592 = vrot.lane.b32.xlu1 %v764_v58, %s911_s23 }
 0x208   : > { %492 = vrot.lane.b32.xlu0 %v760_v59, %s911_s23 }
 0x20b   : > { %v417_v60 = vpop.xlane.xlu1 %416 }
 0x20c   : > { %874 = vrcp.f32 %v417_v60 }
 0x219   : > { %v875_v61 = vpop.eup %874 }
 0x21a   : > { %v431_v62 = vmul.f32 %v875_v61, %v867_v38 }
 0x21c   : > { %v435_v63 = vpack.c.bf16 %v431_v62, %v431_v62 }
 0x21e   : > { %811 = vmatmul.mubr.msk.bf16.vlgmr.msra.gmra.mxu0 %vm206_vm1, %v435_v63 }
 0x21f   : > { %822 = vmatprep.mubr.msk.bf16.mxu0 %vm907_vm0, %v906_v0 }
 0x273   : > { %v420_v1 = vpop.xlane.xlu0 %419 }
 0x274   : > { %876 = vrcp.f32 %v420_v1 }
 0x277   : > { %v423_v2 = vpop.xlane.xlu1 %422 }
 0x278   : > { %878 = vrcp.f32 %v423_v2 }
 0x27b   : > { %v543_v3 = vpop.permute.xlu1 %542  ;;  %v426_v4 = vpop.xlane.xlu0 %425 }
 0x27c   : > { %v548_v5 = vsel %vm446_vm2, %v543_v3, 0  ;;  %880 = vrcp.f32 %v426_v4 }
 0x27d   : > { %821 = vmatpush3.bf16.msra.mxu0 %v548_v5 }
 0x27f   : > { %v493_v6 = vpop.permute.xlu0 %492  ;;  %v593_v10 = vpop.permute.xlu1 %592 }
 0x280   : > { %v498_v7 = vsel %vm446_vm2, %v493_v6, 0  ;;  %v598_v13 = vsel %vm446_vm2, %v593_v10, 0 }
 0x281   : > { %v877_v8 = vpop.eup %876  ;;  %815 = vmatpush3.bf16.msra.mxu1 %v498_v7 }
 0x282   : > { %826 = vmatprep.subr.bf16.mxu1 %v906_v0  ;;  %v432_v9 = vmul.f32 %v877_v8, %v869_v51 }
 0x284   : > { %v436_v11 = vpack.c.bf16 %v432_v9, %v432_v9 }
 0x285   : > { %v879_v12 = vpop.eup %878 }
 0x286   : > { %817 = vmatmul.mubr.msk.bf16.vlgmr.msra.gmra.mxu1 %vm206_vm1, %v436_v11  ;;  %v433_v14 = vmul.f32 %v879_v12, %v871_v53 }
 0x287   : > { %827 = vmatpush3.bf16.msra.mxu1 %v598_v13  ;;  %828 = vmatprep.mubr.msk.bf16.mxu1 %vm907_vm0, %v906_v0 }
 0x288   : > { %v437_v15 = vpack.c.bf16 %v433_v14, %v433_v14 }
 0x289   : > { %v881_v16 = vpop.eup %880 }
 0x28a   : > { %823 = vmatmul.mubr.msk.bf16.vlgmr.msra.gmra.mxu0 %vm206_vm1, %v437_v15  ;;  %v434_v17 = vmul.f32 %v881_v16, %v873_v55 }
 0x28c   : > { %v438_v18 = vpack.c.bf16 %v434_v17, %v434_v17 }
 0x28e   : > { %829 = vmatmul.mubr.msk.bf16.vlgmr.msra.gmra.mxu1 %vm206_vm1, %v438_v18 }
 0x2de   : > { %v484_v19 = vpop.f32.mrf.mxu0 }
 0x2e0   : > { %v812_v20 = vpop.f32.mrf.mxu0 }
 0x2e2   : > { %v487_v21 = vpop.f32.mrf.mxu0 }
 0x2e4   : > { %v813_v22 = vpop.f32.mrf.mxu0 }
 0x346   : > { %v534_v23 = vpop.f32.mrf.mxu1 }
 0x347   : > { %641 = vrot.lane.b32.xlu0 %v534_v23, %s912_s24 }
 0x348   : > { %v818_v24 = vpop.f32.mrf.mxu1 }
 0x34a   : > { %v537_v25 = vpop.f32.mrf.mxu1  ;;  %v584_v26 = vpop.f32.mrf.mxu0 }
 0x34b   : > { %645 = vrot.lane.b32.xlu1 %v584_v26, %s913_s25 }
 0x34c   : > { %v819_v0 = vpop.f32.mrf.mxu1  ;;  %v824_v27 = vpop.f32.mrf.mxu0 }
 0x34e   : > { %v587_v28 = vpop.f32.mrf.mxu0  ;;  %v634_v29 = vpop.f32.mrf.mxu1 }
 0x34f   : > { %649 = vrot.lane.b32.xlu0 %v634_v29, %s914_s26 }
 0x350   : > { %v825_v30 = vpop.f32.mrf.mxu0  ;;  %v830_v31 = vpop.f32.mrf.mxu1 }
 0x352   : > { %v637_v32 = vpop.f32.mrf.mxu1 }
 0x354   : > { %v831_v33 = vpop.f32.mrf.mxu1 }
 0x3b9   : > { %v642_v34 = vpop.permute.xlu0 %641 }
 0x3ba   : > { %v652_v36 = vsel %vm206_vm1, %v484_v19, %v642_v34 }
 0x3bd   : > { %v646_v35 = vpop.permute.xlu1 %645 }
 0x3be   : > { %v654_v37 = vsel %vm653_vm3, %v652_v36, %v646_v35 }
 0x3c1   : > { %v650_v38 = vpop.permute.xlu0 %649 }
 0x3c2   : > { %v656_v39 = vsel %vm655_vm4, %v654_v37, %v650_v38 }
 0x3c3   : > { %v657_v40 = vpack.c.bf16 %v656_v39, %v656_v39 }
 0x3c5   : > { %659 = vst.msk [vmem:[%s186_s29] sm:$0xf] %vm658_vm5, %v657_v40 }
 0x3c6 PF: > { %s12_s11 = sadd.s32 1, %s904_s11   ;;  %s1050_s9 = smov %s900_s10 }
 0x3c7   : > { %p9_p5 = scmp.ge.s32.totalorder %s12_s11, 4   ;;  %s1051_s10 = smov %s1053_s12 }
 0x3c9   :  { %11 = sbr.rel (!%p9_p5) target bundleno = 2 (0x2), region = 61 }

</bundles_post_ra>
